<compile_context>
chip_gen: v5e
topology: v5e:2x2
jax: 0.10.0
libtpu: 0.0.40
codegen_flags: <defaults>
</compile_context>

<pallas_src>
import functools
import math

import jax
import jax.numpy as jnp
from jax import lax
from jax.experimental import pallas as pl
from jax.experimental.pallas import tpu as pltpu

_F32 = jnp.float32
_BF16 = jnp.bfloat16
_NEG_INF = -1e30   # plain Python float; never a captured jax.Array constant


# ------------------------------ helpers ------------------------------------- #

def _gelu(x):
    # tanh-approximate GELU (maps to the EUP tanh unit).
    c = 0.7978845608028654  # sqrt(2/pi)
    return 0.5 * x * (1.0 + jnp.tanh(c * (x + 0.044715 * x * x * x)))


def _layernorm(x, g, b, eps=1e-5):
    mu = jnp.mean(x, axis=-1, keepdims=True)
    xc = x - mu
    var = jnp.mean(xc * xc, axis=-1, keepdims=True)
    return xc * lax.rsqrt(var + eps) * g + b


def _bytes(shape, dtype):
    return int(math.prod(shape)) * jnp.dtype(dtype).itemsize


@functools.lru_cache(maxsize=1)
def _vmem_capacity_bytes():
    try:
        return int(pltpu.get_tpu_info().vmem_capacity_bytes)
    except Exception:
        return None


def _vmem_limit(block_bytes, scratch_bytes=0):
    cap = _vmem_capacity_bytes()
    # ~20% headroom for compiler scratch / semaphores (matters on 64 MiB v7x);
    # on v5e/v6e (128 MiB) this lifts the old 64 MiB clamp.
    budget = (cap * 4) // 5 if cap else (48 << 20)
    est = 2 * block_bytes + scratch_bytes + (4 << 20)
    return int(min(budget, max(32 << 20, est)))


def _largest_tile(n, candidates):
    for c in candidates:
        if n >= c and n % c == 0:
            return c
    return n


def _alibi_slopes(n_heads):
    def pow2_slopes(n):
        start = 2.0 ** (-(2.0 ** -(math.log2(n) - 3)))
        return [start * (start ** i) for i in range(n)]
    if math.log2(n_heads).is_integer():
        return tuple(pow2_slopes(n_heads))
    closest = 2 ** math.floor(math.log2(n_heads))
    return tuple(pow2_slopes(closest)
                 + pow2_slopes(2 * closest)[0::2][: n_heads - closest])


# ------------------------------ kernels ------------------------------------- #

def _ln_qkv_kernel(x_ref, g_ref, b_ref, wqkv_ref, bqkv_ref,
                   q_ref, k_ref, v_ref):
    """LN1 + fused QKV projection for one (batch, seq-tile) block."""
    d = q_ref.shape[-1]
    h = _layernorm(x_ref[0].astype(_F32), g_ref[...], b_ref[...])
    qkv = (jnp.dot(h.astype(wqkv_ref.dtype), wqkv_ref[...],
                   preferred_element_type=_F32) + bqkv_ref[...])
    q_ref[0] = qkv[:, :d].astype(q_ref.dtype)
    k_ref[0] = qkv[:, d:2 * d].astype(k_ref.dtype)
    v_ref[0] = qkv[:, 2 * d:].astype(v_ref.dtype)


def _alibi_flash_kernel(q_ref, k_ref, v_ref, o_ref, m_sc, l_sc, acc_sc,
                        *, slopes, sm_scale, num_heads, head_dim):
    """Flash attention on lane-dense (T, D) tiles with in-kernel ALiBi + causal.

    grid = (batch, q-tile, kv-tile); kv-tile is the (arbitrary) reduction axis.
    q/k/v/out all stay in (B, S, D) layout; heads are split in-kernel.
    """
    qi = pl.program_id(1)
    ki = pl.program_id(2)
    tq = q_ref.shape[1]
    tk = k_ref.shape[1]

    @pl.when(ki == 0)
    def _():
        m_sc[...] = jnp.full(m_sc.shape, _NEG_INF, m_sc.dtype)
        l_sc[...] = jnp.zeros(l_sc.shape, l_sc.dtype)
        acc_sc[...] = jnp.zeros(acc_sc.shape, acc_sc.dtype)

    # Skip KV tiles that lie entirely in the causal future of this Q tile
    # (TQ == TK, so the condition reduces to ki <= qi).  Their K/V DMA is also
    # avoided because the K/V index_map is clamped to min(ki, qi).
    @pl.when(ki <= qi)
    def _():
        q = q_ref[0]                                     # (TQ, D) bf16
        k = k_ref[0]                                     # (TK, D) bf16
        v = v_ref[0]                                     # (TK, D) bf16
        q_pos = qi * tq + lax.broadcasted_iota(jnp.int32, (tq, tk), 0)
        k_pos = ki * tk + lax.broadcasted_iota(jnp.int32, (tq, tk), 1)
        rel = q_pos - k_pos                              # >= 0 in causal region
        mask = rel >= 0
        relf = rel.astype(_F32)

        for h in range(num_heads):                       # static unroll over heads
            sl = h * head_dim
            q_h = q[:, sl:sl + head_dim]
            k_h = k[:, sl:sl + head_dim]
            v_h = v[:, sl:sl + head_dim]
            # s = q_h @ k_h^T (contract head dim; no explicit transpose needed)
            s = lax.dot_general(q_h, k_h, (((1,), (1,)), ((), ())),
                                preferred_element_type=_F32)
            s = s * sm_scale - slopes[h] * relf          # ALiBi linear bias
            s = jnp.where(mask, s, _NEG_INF)             # single mask pass

            m_old = m_sc[h]                              # (TQ, 1)
            m_new = jnp.maximum(m_old, jnp.max(s, axis=-1, keepdims=True))
            alpha = jnp.exp(m_old - m_new)
            p = jnp.exp(s - m_new)                       # masked entries underflow to 0
            l_sc[h] = alpha * l_sc[h] + jnp.sum(p, axis=-1, keepdims=True)
            acc_sc[:, sl:sl + head_dim] = (
                alpha * acc_sc[:, sl:sl + head_dim]
                + jnp.dot(p.astype(v_h.dtype), v_h, preferred_element_type=_F32))
            m_sc[h] = m_new

    @pl.when(ki == pl.num_programs(2) - 1)
    def _():
        for h in range(num_heads):
            sl = h * head_dim
            acc_sc[:, sl:sl + head_dim] = acc_sc[:, sl:sl + head_dim] / l_sc[h]
        o_ref[0] = acc_sc[...].astype(o_ref.dtype)       # one lane-dense store


def _out_ffn_kernel(x_ref, ctx_ref, wo_ref, bo_ref, ln2g_ref, ln2b_ref,
                    w1_ref, b1_ref, w2_ref, b2_ref, out_ref,
                    h2_sc, acc_sc):
    """Output projection + residual + LN2 + GELU MLP (d_ff tiled) + residual.

    grid = (batch, seq-tile, ff-tile); ff-tile is the (arbitrary) reduction axis.
    """
    fi = pl.program_id(2)

    @pl.when(fi == 0)
    def _():
        attn = jnp.dot(ctx_ref[0], wo_ref[...],
                       preferred_element_type=_F32) + bo_ref[...]
        x1 = x_ref[0].astype(_F32) + attn
        h2_sc[...] = _layernorm(x1, ln2g_ref[...], ln2b_ref[...]).astype(h2_sc.dtype)
        acc_sc[...] = x1 + b2_ref[...]     # residual + final bias folded into acc

    f = _gelu(jnp.dot(h2_sc[...], w1_ref[...],
                      preferred_element_type=_F32) + b1_ref[...])
    acc_sc[...] += jnp.dot(f.astype(w2_ref.dtype), w2_ref[...],
                           preferred_element_type=_F32)

    @pl.when(fi == pl.num_programs(2) - 1)
    def _():
        out_ref[0] = acc_sc[...].astype(out_ref.dtype)


# ------------------------------ layer wrapper -------------------------------- #

def _layer_forward(x, p, num_heads):
    B, S, D = x.shape
    H = num_heads
    hd = D // H
    FF = p['w1'].shape[1]
    cdt = _BF16

    # 256-wide seq tiles fill the 2x256x256 MXU on v6e/v7x; fall back to 128
    # or the full (small) sequence.  TQ == TK so the causal skip is ki <= qi.
    TS = _largest_tile(S, (256, 128))
    TQ = TK = TS
    TFF = _largest_tile(FF, (2048, 1024, 512))

    # ---- 1. LN1 + fused QKV projection, tiled over (batch, seq) -------------
    blk1 = (4 * _bytes((1, TS, D), cdt) + _bytes((D, 3 * D), cdt)
            + _bytes((1, 3 * D), _F32) + 2 * _bytes((1, D), _F32))
    q, k, v = pl.pallas_call(
        _ln_qkv_kernel,
        out_shape=[jax.ShapeDtypeStruct((B, S, D), cdt)] * 3,
        grid=(B, S // TS),
        in_specs=[
            pl.BlockSpec((1, TS, D), lambda b, s: (b, s, 0)),     # x tile
            pl.BlockSpec((1, D), lambda b, s: (0, 0)),            # ln1_g
            pl.BlockSpec((1, D), lambda b, s: (0, 0)),            # ln1_b
            pl.BlockSpec((D, 3 * D), lambda b, s: (0, 0)),        # fused wqkv
            pl.BlockSpec((1, 3 * D), lambda b, s: (0, 0)),        # fused bqkv
        ],
        out_specs=[pl.BlockSpec((1, TS, D), lambda b, s: (b, s, 0))] * 3,
        compiler_params=pltpu.CompilerParams(
            dimension_semantics=("parallel", "parallel"),
            vmem_limit_bytes=_vmem_limit(blk1)),
    )(x, p['ln1_g'], p['ln1_b'], p['wqkv'], p['bqkv'])

    # ---- 2. flash attention with in-kernel ALiBi bias (no XLA relayouts) -----
    attn_kernel = functools.partial(
        _alibi_flash_kernel,
        slopes=_alibi_slopes(H), sm_scale=1.0 / math.sqrt(hd),
        num_heads=H, head_dim=hd)
    blk2 = 4 * _bytes((1, TQ, D), cdt)
    scr2 = 2 * _bytes((H, TQ, 1), _F32) + _bytes((TQ, D), _F32)
    kv_map = lambda b, qi, ki: (b, jnp.minimum(ki, qi), 0)   # no DMA for future tiles
    ctx = pl.pallas_call(
        attn_kernel,
        out_shape=jax.ShapeDtypeStruct((B, S, D), cdt),
        grid=(B, S // TQ, S // TK),
        in_specs=[
            pl.BlockSpec((1, TQ, D), lambda b, qi, ki: (b, qi, 0)),   # q
            pl.BlockSpec((1, TK, D), kv_map),                         # k
            pl.BlockSpec((1, TK, D), kv_map),                         # v
        ],
        out_specs=pl.BlockSpec((1, TQ, D), lambda b, qi, ki: (b, qi, 0)),
        scratch_shapes=[
            pltpu.VMEM((H, TQ, 1), _F32),     # running max (per head)
            pltpu.VMEM((H, TQ, 1), _F32),     # running sum (per head)
            pltpu.VMEM((TQ, D), _F32),        # lane-dense output accumulator
        ],
        compiler_params=pltpu.CompilerParams(
            dimension_semantics=("parallel", "parallel", "arbitrary"),
            vmem_limit_bytes=_vmem_limit(blk2, scr2)),
    )(q, k, v)

    # ---- 3. out-proj + residual + LN2 + FFN (d_ff tiled) + residual ----------
    blk3 = (3 * _bytes((1, TS, D), cdt) + _bytes((D, D), cdt)
            + _bytes((D, TFF), cdt) + _bytes((TFF, D), cdt)
            + _bytes((1, TFF), _F32) + 4 * _bytes((1, D), _F32))
    scr3 = _bytes((TS, D), _BF16) + _bytes((TS, D), _F32)
    out = pl.pallas_call(
        _out_ffn_kernel,
        out_shape=jax.ShapeDtypeStruct((B, S, D), cdt),
        grid=(B, S // TS, FF // TFF),
        in_specs=[
            pl.BlockSpec((1, TS, D), lambda b, s, f: (b, s, 0)),    # x (residual)
            pl.BlockSpec((1, TS, D), lambda b, s, f: (b, s, 0)),    # ctx
            pl.BlockSpec((D, D), lambda b, s, f: (0, 0)),           # wo
            pl.BlockSpec((1, D), lambda b, s, f: (0, 0)),           # bo
            pl.BlockSpec((1, D), lambda b, s, f: (0, 0)),           # ln2_g
            pl.BlockSpec((1, D), lambda b, s, f: (0, 0)),           # ln2_b
            pl.BlockSpec((D, TFF), lambda b, s, f: (0, f)),         # w1 chunk
            pl.BlockSpec((1, TFF), lambda b, s, f: (0, f)),         # b1 chunk
            pl.BlockSpec((TFF, D), lambda b, s, f: (f, 0)),         # w2 chunk
            pl.BlockSpec((1, D), lambda b, s, f: (0, 0)),           # b2
        ],
        out_specs=pl.BlockSpec((1, TS, D), lambda b, s, f: (b, s, 0)),
        scratch_shapes=[
            pltpu.VMEM((TS, D), _BF16),   # LN2(x1)
            pltpu.VMEM((TS, D), _F32),    # FFN accumulator (residual + b2 folded)
        ],
        compiler_params=pltpu.CompilerParams(
            dimension_semantics=("parallel", "parallel", "arbitrary"),
            vmem_limit_bytes=_vmem_limit(blk3, scr3)),
    )(x, ctx, p['wo'], p['bo'], p['ln2_g'], p['ln2_b'],
      p['w1'], p['b1'], p['w2'], p['b2'])
    return out


# ------------------------------ model wrapper -------------------------------- #

def init_layer_params(key, d_model, d_ff):
    ks = jax.random.split(key, 6)
    std = 0.02

    def w(k, shape):
        return (std * jax.random.normal(k, shape, _F32)).astype(_BF16)

    # wq/wk/wv fused into one (D, 3D) weight -> single MXU pass in the QKV kernel.
    return dict(
        ln1_g=jnp.ones((1, d_model), _F32), ln1_b=jnp.zeros((1, d_model), _F32),
        wqkv=jnp.concatenate(
            [w(ks[0], (d_model, d_model)), w(ks[1], (d_model, d_model)),
             w(ks[2], (d_model, d_model))], axis=1),
        bqkv=jnp.zeros((1, 3 * d_model), _F32),
        wo=w(ks[3], (d_model, d_model)), bo=jnp.zeros((1, d_model), _F32),
        ln2_g=jnp.ones((1, d_model), _F32), ln2_b=jnp.zeros((1, d_model), _F32),
        w1=w(ks[4], (d_model, d_ff)), b1=jnp.zeros((1, d_ff), _F32),
        w2=w(ks[5], (d_ff, d_model)), b2=jnp.zeros((1, d_model), _F32),
    )


@functools.partial(jax.jit, static_argnames=("num_heads",))
def alibi_transformer_forward(x, layer_params, num_heads):
    x = x.astype(_BF16)
    for p in layer_params:
        x = _layer_forward(x, p, num_heads)
    return x.astype(_F32)


class ALiBiTransformerPallas:
    """Mirrors ALiBiTransformer.forward: max_len check + sequential layer stack."""

    def __init__(self, layer_params, num_heads, max_len):
        self.layer_params = tuple(layer_params)
        self.num_heads = num_heads
        self.max_len = max_len

    def __call__(self, x):
        _, seq_len, _ = x.shape
        assert seq_len <= self.max_len, 'sequence length exceeds `max_len`'
        return alibi_transformer_forward(x, self.layer_params,
                                         num_heads=self.num_heads)


# ------------------------------ main ----------------------------------------- #

if __name__ == "__main__":
    B, S, D, H, FF = 2, 8, 32, 4, 128
    NUM_LAYERS, MAX_LEN = 2, 16

    key = jax.random.PRNGKey(0)
    keys = jax.random.split(key, 1 + NUM_LAYERS)
    x = jax.random.normal(keys[0], (B, S, D), jnp.float32)

    params = [init_layer_params(keys[1 + i], D, FF) for i in range(NUM_LAYERS)]
    model = ALiBiTransformerPallas(params, num_heads=H, max_len=MAX_LEN)

    y = model(x)
    jax.block_until_ready(y)
    assert y.shape == (B, S, D)
    assert bool(jnp.all(jnp.isfinite(y)))
    print("KERNEL_OK")
</pallas_src>

<mosaic_0001>
module attributes {stable_mosaic.version = 11 : i64} {
  func.func @_alibi_flash_kernel(%arg0: i32, %arg1: i32, %arg2: i32, %arg3: memref<1x8x32xbf16, #tpu.memory_space<vmem>>, %arg4: memref<1x8x32xbf16, #tpu.memory_space<vmem>>, %arg5: memref<1x8x32xbf16, #tpu.memory_space<vmem>>, %arg6: memref<1x8x32xbf16, #tpu.memory_space<vmem>>, %arg7: memref<4x8x1xf32, #tpu.memory_space<vmem>>, %arg8: memref<4x8x1xf32, #tpu.memory_space<vmem>>, %arg9: memref<8x32xf32, #tpu.memory_space<vmem>>) attributes {dimension_semantics = [#tpu.dimension_semantics<parallel>, #tpu.dimension_semantics<parallel>, #tpu.dimension_semantics<arbitrary>], iteration_bounds = array<i64: 2, 1, 1>, scalar_prefetch = 0 : i64, scratch_operands = 3 : i64, tpu.core_type = #tpu.core_type<tc>, window_params = [{transform_indices = @transform_0, window_bounds = array<i64: 1, 8, 32>}, {transform_indices = @transform_1, window_bounds = array<i64: 1, 8, 32>}, {transform_indices = @transform_2, window_bounds = array<i64: 1, 8, 32>}, {transform_indices = @transform_3, window_bounds = array<i64: 1, 8, 32>}]} {
    %c0_i32 = arith.constant 0 : i32
    %0 = arith.cmpi eq, %arg2, %c0_i32 : i32
    %1 = arith.extui %0 : i1 to i32
    %c0_i32_0 = arith.constant 0 : i32
    %2 = arith.cmpi ne, %1, %c0_i32_0 : i32
    scf.if %2 {
      %cst = arith.constant -1.000000e+30 : f32
      %9 = vector.broadcast %cst : f32 to vector<4x8x1xf32>
      %c0 = arith.constant 0 : index
      %c0_4 = arith.constant 0 : index
      %c0_5 = arith.constant 0 : index
      %10 = vector.load %arg7[%c0, %c0_4, %c0_5] : memref<4x8x1xf32, #tpu.memory_space<vmem>>, vector<4x8x1xf32>
      tpu.vector_store %arg7[%c0, %c0_4, %c0_5], %9 {strides = array<i32>} : memref<4x8x1xf32, #tpu.memory_space<vmem>>, vector<4x8x1xf32>,
      %cst_6 = arith.constant 0.000000e+00 : f32
      %11 = vector.broadcast %cst_6 : f32 to vector<4x8x1xf32>
      %c0_7 = arith.constant 0 : index
      %c0_8 = arith.constant 0 : index
      %c0_9 = arith.constant 0 : index
      %12 = vector.load %arg8[%c0_7, %c0_8, %c0_9] : memref<4x8x1xf32, #tpu.memory_space<vmem>>, vector<4x8x1xf32>
      tpu.vector_store %arg8[%c0_7, %c0_8, %c0_9], %11 {strides = array<i32>} : memref<4x8x1xf32, #tpu.memory_space<vmem>>, vector<4x8x1xf32>,
      %cst_10 = arith.constant 0.000000e+00 : f32
      %13 = vector.broadcast %cst_10 : f32 to vector<8x32xf32>
      %c0_11 = arith.constant 0 : index
      %c0_12 = arith.constant 0 : index
      %14 = vector.load %arg9[%c0_11, %c0_12] : memref<8x32xf32, #tpu.memory_space<vmem>>, vector<8x32xf32>
      tpu.vector_store %arg9[%c0_11, %c0_12], %13 {strides = array<i32>} : memref<8x32xf32, #tpu.memory_space<vmem>>, vector<8x32xf32>,
    } else {
    }
    %3 = arith.cmpi sle, %arg2, %arg1 : i32
    %4 = arith.extui %3 : i1 to i32
    %c0_i32_1 = arith.constant 0 : i32
    %5 = arith.cmpi ne, %4, %c0_i32_1 : i32
    scf.if %5 {
      %c0 = arith.constant 0 : index
      %c0_4 = arith.constant 0 : index
      %c0_5 = arith.constant 0 : index
      %9 = vector.load %arg3[%c0, %c0_4, %c0_5] : memref<1x8x32xbf16, #tpu.memory_space<vmem>>, vector<1x8x32xbf16>
      %10 = vector.shape_cast %9 : vector<1x8x32xbf16> to vector<8x32xbf16>
      %c0_6 = arith.constant 0 : index
      %c0_7 = arith.constant 0 : index
      %c0_8 = arith.constant 0 : index
      %11 = vector.load %arg4[%c0_6, %c0_7, %c0_8] : memref<1x8x32xbf16, #tpu.memory_space<vmem>>, vector<1x8x32xbf16>
      %12 = vector.shape_cast %11 : vector<1x8x32xbf16> to vector<8x32xbf16>
      %c0_9 = arith.constant 0 : index
      %c0_10 = arith.constant 0 : index
      %c0_11 = arith.constant 0 : index
      %13 = vector.load %arg5[%c0_9, %c0_10, %c0_11] : memref<1x8x32xbf16, #tpu.memory_space<vmem>>, vector<1x8x32xbf16>
      %14 = vector.shape_cast %13 : vector<1x8x32xbf16> to vector<8x32xbf16>
      %c8_i32 = arith.constant 8 : i32
      %15 = arith.muli %arg1, %c8_i32 : i32
      %16 = tpu.iota {dimensions = array<i32: 0>} : vector<8x8xi32>
      %17 = vector.broadcast %15 : i32 to vector<8x8xi32>
      %18 = arith.addi %17, %16 : vector<8x8xi32>
      %c8_i32_12 = arith.constant 8 : i32
      %19 = arith.muli %arg2, %c8_i32_12 : i32
      %20 = tpu.iota {dimensions = array<i32: 1>} : vector<8x8xi32>
      %21 = vector.broadcast %19 : i32 to vector<8x8xi32>
      %22 = arith.addi %21, %20 : vector<8x8xi32>
      %23 = arith.subi %18, %22 : vector<8x8xi32>
      %c0_i32_13 = arith.constant 0 : i32
      %24 = vector.broadcast %c0_i32_13 : i32 to vector<8x8xi32>
      %25 = arith.cmpi sge, %23, %24 : vector<8x8xi32>
      %26 = arith.sitofp %23 : vector<8x8xi32> to vector<8x8xf32>
      %27 = vector.extract_strided_slice %10 {offsets = [0, 0], sizes = [8, 8], strides = [1, 1]} : vector<8x32xbf16> to vector<8x8xbf16>
      %28 = vector.extract_strided_slice %12 {offsets = [0, 0], sizes = [8, 8], strides = [1, 1]} : vector<8x32xbf16> to vector<8x8xbf16>
      %29 = vector.extract_strided_slice %14 {offsets = [0, 0], sizes = [8, 8], strides = [1, 1]} : vector<8x32xbf16> to vector<8x8xbf16>
      %cst = arith.constant dense<0.000000e+00> : vector<8x8xf32>
      %30 = tpu.matmul %27, %28, %cst {dimension_numbers = #tpu.dot_dimension_numbers<[1], [1], [0], [0], [0, 0, 1, 0], [], []>} : vector<8x8xbf16>, vector<8x8xbf16>, vector<8x8xf32> -> vector<8x8xf32>
      %cst_14 = arith.constant 0.353553385 : f32
      %31 = vector.broadcast %cst_14 : f32 to vector<8x8xf32>
      %32 = arith.mulf %30, %31 : vector<8x8xf32>
      %cst_15 = arith.constant 2.500000e-01 : f32
      %33 = vector.broadcast %cst_15 : f32 to vector<8x8xf32>
      %34 = arith.mulf %33, %26 : vector<8x8xf32>
      %35 = arith.subf %32, %34 : vector<8x8xf32>
      %cst_16 = arith.constant -1.000000e+30 : f32
      %36 = vector.broadcast %cst_16 : f32 to vector<8x8xf32>
      %37 = arith.select %25, %35, %36 : vector<8x8xi1>, vector<8x8xf32>
      %c0_17 = arith.constant 0 : index
      %c0_18 = arith.constant 0 : index
      %c0_19 = arith.constant 0 : index
      %38 = vector.load %arg7[%c0_17, %c0_18, %c0_19] : memref<4x8x1xf32, #tpu.memory_space<vmem>>, vector<1x8x1xf32>
      %39 = vector.shape_cast %38 : vector<1x8x1xf32> to vector<8x1xf32>
      %cst_20 = arith.constant dense<0xFF800000> : vector<8xf32>
      %40 = vector.multi_reduction <maximumf>, %37, %cst_20 [1] : vector<8x8xf32> to vector<8xf32>
      %41 = vector.shape_cast %40 : vector<8xf32> to vector<8x1xf32>
      %42 = arith.maximumf %39, %41 : vector<8x1xf32>
      %43 = arith.subf %39, %42 : vector<8x1xf32>
      %44 = math.exp %43 : vector<8x1xf32>
      %45 = vector.broadcast %42 : vector<8x1xf32> to vector<8x8xf32>
      %46 = arith.subf %37, %45 : vector<8x8xf32>
      %47 = math.exp %46 : vector<8x8xf32>
      %c0_21 = arith.constant 0 : index
      %c0_22 = arith.constant 0 : index
      %c0_23 = arith.constant 0 : index
      %48 = vector.load %arg8[%c0_21, %c0_22, %c0_23] : memref<4x8x1xf32, #tpu.memory_space<vmem>>, vector<1x8x1xf32>
      %49 = vector.shape_cast %48 : vector<1x8x1xf32> to vector<8x1xf32>
      %50 = arith.mulf %44, %49 : vector<8x1xf32>
      %cst_24 = arith.constant dense<0.000000e+00> : vector<8xf32>
      %51 = vector.multi_reduction <add>, %47, %cst_24 [1] : vector<8x8xf32> to vector<8xf32>
      %52 = vector.shape_cast %51 : vector<8xf32> to vector<8x1xf32>
      %53 = arith.addf %50, %52 : vector<8x1xf32>
      %c0_25 = arith.constant 0 : index
      %c0_26 = arith.constant 0 : index
      %c0_27 = arith.constant 0 : index
      %54 = vector.load %arg8[%c0_25, %c0_26, %c0_27] : memref<4x8x1xf32, #tpu.memory_space<vmem>>, vector<1x8x1xf32>
      %55 = vector.shape_cast %54 : vector<1x8x1xf32> to vector<8x1xf32>
      %56 = vector.shape_cast %53 : vector<8x1xf32> to vector<1x8x1xf32>
      tpu.vector_store %arg8[%c0_25, %c0_26, %c0_27], %56 {strides = array<i32>} : memref<4x8x1xf32, #tpu.memory_space<vmem>>, vector<1x8x1xf32>,
      %c0_28 = arith.constant 0 : index
      %c0_29 = arith.constant 0 : index
      %57 = vector.load %arg9[%c0_28, %c0_29] : memref<8x32xf32, #tpu.memory_space<vmem>>, vector<8x8xf32>
      %58 = vector.broadcast %44 : vector<8x1xf32> to vector<8x8xf32>
      %59 = arith.mulf %58, %57 : vector<8x8xf32>
      %60 = arith.truncf %47 : vector<8x8xf32> to vector<8x8xbf16>
      %cst_30 = arith.constant dense<0.000000e+00> : vector<8x8xf32>
      %61 = tpu.matmul %60, %29, %cst_30 {dimension_numbers = #tpu.dot_dimension_numbers<[1], [0], [0], [1], [0, 0, 1, 1], [], []>} : vector<8x8xbf16>, vector<8x8xbf16>, vector<8x8xf32> -> vector<8x8xf32>
      %62 = arith.addf %59, %61 : vector<8x8xf32>
      %c0_31 = arith.constant 0 : index
      %c0_32 = arith.constant 0 : index
      %63 = vector.load %arg9[%c0_31, %c0_32] : memref<8x32xf32, #tpu.memory_space<vmem>>, vector<8x8xf32>
      tpu.vector_store %arg9[%c0_31, %c0_32], %62 {strides = array<i32>} : memref<8x32xf32, #tpu.memory_space<vmem>>, vector<8x8xf32>,
      %c0_33 = arith.constant 0 : index
      %c0_34 = arith.constant 0 : index
      %c0_35 = arith.constant 0 : index
      %64 = vector.load %arg7[%c0_33, %c0_34, %c0_35] : memref<4x8x1xf32, #tpu.memory_space<vmem>>, vector<1x8x1xf32>
      %65 = vector.shape_cast %64 : vector<1x8x1xf32> to vector<8x1xf32>
      %66 = vector.shape_cast %42 : vector<8x1xf32> to vector<1x8x1xf32>
      tpu.vector_store %arg7[%c0_33, %c0_34, %c0_35], %66 {strides = array<i32>} : memref<4x8x1xf32, #tpu.memory_space<vmem>>, vector<1x8x1xf32>,
      %67 = vector.extract_strided_slice %10 {offsets = [0, 8], sizes = [8, 8], strides = [1, 1]} : vector<8x32xbf16> to vector<8x8xbf16>
      %68 = vector.extract_strided_slice %12 {offsets = [0, 8], sizes = [8, 8], strides = [1, 1]} : vector<8x32xbf16> to vector<8x8xbf16>
      %69 = vector.extract_strided_slice %14 {offsets = [0, 8], sizes = [8, 8], strides = [1, 1]} : vector<8x32xbf16> to vector<8x8xbf16>
      %cst_36 = arith.constant dense<0.000000e+00> : vector<8x8xf32>
      %70 = tpu.matmul %67, %68, %cst_36 {dimension_numbers = #tpu.dot_dimension_numbers<[1], [1], [0], [0], [0, 0, 1, 0], [], []>} : vector<8x8xbf16>, vector<8x8xbf16>, vector<8x8xf32> -> vector<8x8xf32>
      %cst_37 = arith.constant 0.353553385 : f32
      %71 = vector.broadcast %cst_37 : f32 to vector<8x8xf32>
      %72 = arith.mulf %70, %71 : vector<8x8xf32>
      %cst_38 = arith.constant 6.250000e-02 : f32
      %73 = vector.broadcast %cst_38 : f32 to vector<8x8xf32>
      %74 = arith.mulf %73, %26 : vector<8x8xf32>
      %75 = arith.subf %72, %74 : vector<8x8xf32>
      %cst_39 = arith.constant -1.000000e+30 : f32
      %76 = vector.broadcast %cst_39 : f32 to vector<8x8xf32>
      %77 = arith.select %25, %75, %76 : vector<8x8xi1>, vector<8x8xf32>
      %c1 = arith.constant 1 : index
      %c0_40 = arith.constant 0 : index
      %c0_41 = arith.constant 0 : index
      %78 = vector.load %arg7[%c1, %c0_40, %c0_41] : memref<4x8x1xf32, #tpu.memory_space<vmem>>, vector<1x8x1xf32>
      %79 = vector.shape_cast %78 : vector<1x8x1xf32> to vector<8x1xf32>
      %cst_42 = arith.constant dense<0xFF800000> : vector<8xf32>
      %80 = vector.multi_reduction <maximumf>, %77, %cst_42 [1] : vector<8x8xf32> to vector<8xf32>
      %81 = vector.shape_cast %80 : vector<8xf32> to vector<8x1xf32>
      %82 = arith.maximumf %79, %81 : vector<8x1xf32>
      %83 = arith.subf %79, %82 : vector<8x1xf32>
      %84 = math.exp %83 : vector<8x1xf32>
      %85 = vector.broadcast %82 : vector<8x1xf32> to vector<8x8xf32>
      %86 = arith.subf %77, %85 : vector<8x8xf32>
      %87 = math.exp %86 : vector<8x8xf32>
      %c1_43 = arith.constant 1 : index
      %c0_44 = arith.constant 0 : index
      %c0_45 = arith.constant 0 : index
      %88 = vector.load %arg8[%c1_43, %c0_44, %c0_45] : memref<4x8x1xf32, #tpu.memory_space<vmem>>, vector<1x8x1xf32>
      %89 = vector.shape_cast %88 : vector<1x8x1xf32> to vector<8x1xf32>
      %90 = arith.mulf %84, %89 : vector<8x1xf32>
      %cst_46 = arith.constant dense<0.000000e+00> : vector<8xf32>
      %91 = vector.multi_reduction <add>, %87, %cst_46 [1] : vector<8x8xf32> to vector<8xf32>
      %92 = vector.shape_cast %91 : vector<8xf32> to vector<8x1xf32>
      %93 = arith.addf %90, %92 : vector<8x1xf32>
      %c1_47 = arith.constant 1 : index
      %c0_48 = arith.constant 0 : index
      %c0_49 = arith.constant 0 : index
      %94 = vector.load %arg8[%c1_47, %c0_48, %c0_49] : memref<4x8x1xf32, #tpu.memory_space<vmem>>, vector<1x8x1xf32>
      %95 = vector.shape_cast %94 : vector<1x8x1xf32> to vector<8x1xf32>
      %96 = vector.shape_cast %93 : vector<8x1xf32> to vector<1x8x1xf32>
      tpu.vector_store %arg8[%c1_47, %c0_48, %c0_49], %96 {strides = array<i32>} : memref<4x8x1xf32, #tpu.memory_space<vmem>>, vector<1x8x1xf32>,
      %c0_50 = arith.constant 0 : index
      %c8 = arith.constant 8 : index
      %97 = vector.load %arg9[%c0_50, %c8] : memref<8x32xf32, #tpu.memory_space<vmem>>, vector<8x8xf32>
      %98 = vector.broadcast %84 : vector<8x1xf32> to vector<8x8xf32>
      %99 = arith.mulf %98, %97 : vector<8x8xf32>
      %100 = arith.truncf %87 : vector<8x8xf32> to vector<8x8xbf16>
      %cst_51 = arith.constant dense<0.000000e+00> : vector<8x8xf32>
      %101 = tpu.matmul %100, %69, %cst_51 {dimension_numbers = #tpu.dot_dimension_numbers<[1], [0], [0], [1], [0, 0, 1, 1], [], []>} : vector<8x8xbf16>, vector<8x8xbf16>, vector<8x8xf32> -> vector<8x8xf32>
      %102 = arith.addf %99, %101 : vector<8x8xf32>
      %c0_52 = arith.constant 0 : index
      %c8_53 = arith.constant 8 : index
      %103 = vector.load %arg9[%c0_52, %c8_53] : memref<8x32xf32, #tpu.memory_space<vmem>>, vector<8x8xf32>
      tpu.vector_store %arg9[%c0_52, %c8_53], %102 {strides = array<i32>} : memref<8x32xf32, #tpu.memory_space<vmem>>, vector<8x8xf32>,
      %c1_54 = arith.constant 1 : index
      %c0_55 = arith.constant 0 : index
      %c0_56 = arith.constant 0 : index
      %104 = vector.load %arg7[%c1_54, %c0_55, %c0_56] : memref<4x8x1xf32, #tpu.memory_space<vmem>>, vector<1x8x1xf32>
      %105 = vector.shape_cast %104 : vector<1x8x1xf32> to vector<8x1xf32>
      %106 = vector.shape_cast %82 : vector<8x1xf32> to vector<1x8x1xf32>
      tpu.vector_store %arg7[%c1_54, %c0_55, %c0_56], %106 {strides = array<i32>} : memref<4x8x1xf32, #tpu.memory_space<vmem>>, vector<1x8x1xf32>,
      %107 = vector.extract_strided_slice %10 {offsets = [0, 16], sizes = [8, 8], strides = [1, 1]} : vector<8x32xbf16> to vector<8x8xbf16>
      %108 = vector.extract_strided_slice %12 {offsets = [0, 16], sizes = [8, 8], strides = [1, 1]} : vector<8x32xbf16> to vector<8x8xbf16>
      %109 = vector.extract_strided_slice %14 {offsets = [0, 16], sizes = [8, 8], strides = [1, 1]} : vector<8x32xbf16> to vector<8x8xbf16>
      %cst_57 = arith.constant dense<0.000000e+00> : vector<8x8xf32>
      %110 = tpu.matmul %107, %108, %cst_57 {dimension_numbers = #tpu.dot_dimension_numbers<[1], [1], [0], [0], [0, 0, 1, 0], [], []>} : vector<8x8xbf16>, vector<8x8xbf16>, vector<8x8xf32> -> vector<8x8xf32>
      %cst_58 = arith.constant 0.353553385 : f32
      %111 = vector.broadcast %cst_58 : f32 to vector<8x8xf32>
      %112 = arith.mulf %110, %111 : vector<8x8xf32>
      %cst_59 = arith.constant 1.562500e-02 : f32
      %113 = vector.broadcast %cst_59 : f32 to vector<8x8xf32>
      %114 = arith.mulf %113, %26 : vector<8x8xf32>
      %115 = arith.subf %112, %114 : vector<8x8xf32>
      %cst_60 = arith.constant -1.000000e+30 : f32
      %116 = vector.broadcast %cst_60 : f32 to vector<8x8xf32>
      %117 = arith.select %25, %115, %116 : vector<8x8xi1>, vector<8x8xf32>
      %c2 = arith.constant 2 : index
      %c0_61 = arith.constant 0 : index
      %c0_62 = arith.constant 0 : index
      %118 = vector.load %arg7[%c2, %c0_61, %c0_62] : memref<4x8x1xf32, #tpu.memory_space<vmem>>, vector<1x8x1xf32>
      %119 = vector.shape_cast %118 : vector<1x8x1xf32> to vector<8x1xf32>
      %cst_63 = arith.constant dense<0xFF800000> : vector<8xf32>
      %120 = vector.multi_reduction <maximumf>, %117, %cst_63 [1] : vector<8x8xf32> to vector<8xf32>
      %121 = vector.shape_cast %120 : vector<8xf32> to vector<8x1xf32>
      %122 = arith.maximumf %119, %121 : vector<8x1xf32>
      %123 = arith.subf %119, %122 : vector<8x1xf32>
      %124 = math.exp %123 : vector<8x1xf32>
      %125 = vector.broadcast %122 : vector<8x1xf32> to vector<8x8xf32>
      %126 = arith.subf %117, %125 : vector<8x8xf32>
      %127 = math.exp %126 : vector<8x8xf32>
      %c2_64 = arith.constant 2 : index
      %c0_65 = arith.constant 0 : index
      %c0_66 = arith.constant 0 : index
      %128 = vector.load %arg8[%c2_64, %c0_65, %c0_66] : memref<4x8x1xf32, #tpu.memory_space<vmem>>, vector<1x8x1xf32>
      %129 = vector.shape_cast %128 : vector<1x8x1xf32> to vector<8x1xf32>
      %130 = arith.mulf %124, %129 : vector<8x1xf32>
      %cst_67 = arith.constant dense<0.000000e+00> : vector<8xf32>
      %131 = vector.multi_reduction <add>, %127, %cst_67 [1] : vector<8x8xf32> to vector<8xf32>
      %132 = vector.shape_cast %131 : vector<8xf32> to vector<8x1xf32>
      %133 = arith.addf %130, %132 : vector<8x1xf32>
      %c2_68 = arith.constant 2 : index
      %c0_69 = arith.constant 0 : index
      %c0_70 = arith.constant 0 : index
      %134 = vector.load %arg8[%c2_68, %c0_69, %c0_70] : memref<4x8x1xf32, #tpu.memory_space<vmem>>, vector<1x8x1xf32>
      %135 = vector.shape_cast %134 : vector<1x8x1xf32> to vector<8x1xf32>
      %136 = vector.shape_cast %133 : vector<8x1xf32> to vector<1x8x1xf32>
      tpu.vector_store %arg8[%c2_68, %c0_69, %c0_70], %136 {strides = array<i32>} : memref<4x8x1xf32, #tpu.memory_space<vmem>>, vector<1x8x1xf32>,
      %c0_71 = arith.constant 0 : index
      %c16 = arith.constant 16 : index
      %137 = vector.load %arg9[%c0_71, %c16] : memref<8x32xf32, #tpu.memory_space<vmem>>, vector<8x8xf32>
      %138 = vector.broadcast %124 : vector<8x1xf32> to vector<8x8xf32>
      %139 = arith.mulf %138, %137 : vector<8x8xf32>
      %140 = arith.truncf %127 : vector<8x8xf32> to vector<8x8xbf16>
      %cst_72 = arith.constant dense<0.000000e+00> : vector<8x8xf32>
      %141 = tpu.matmul %140, %109, %cst_72 {dimension_numbers = #tpu.dot_dimension_numbers<[1], [0], [0], [1], [0, 0, 1, 1], [], []>} : vector<8x8xbf16>, vector<8x8xbf16>, vector<8x8xf32> -> vector<8x8xf32>
      %142 = arith.addf %139, %141 : vector<8x8xf32>
      %c0_73 = arith.constant 0 : index
      %c16_74 = arith.constant 16 : index
      %143 = vector.load %arg9[%c0_73, %c16_74] : memref<8x32xf32, #tpu.memory_space<vmem>>, vector<8x8xf32>
      tpu.vector_store %arg9[%c0_73, %c16_74], %142 {strides = array<i32>} : memref<8x32xf32, #tpu.memory_space<vmem>>, vector<8x8xf32>,
      %c2_75 = arith.constant 2 : index
      %c0_76 = arith.constant 0 : index
      %c0_77 = arith.constant 0 : index
      %144 = vector.load %arg7[%c2_75, %c0_76, %c0_77] : memref<4x8x1xf32, #tpu.memory_space<vmem>>, vector<1x8x1xf32>
      %145 = vector.shape_cast %144 : vector<1x8x1xf32> to vector<8x1xf32>
      %146 = vector.shape_cast %122 : vector<8x1xf32> to vector<1x8x1xf32>
      tpu.vector_store %arg7[%c2_75, %c0_76, %c0_77], %146 {strides = array<i32>} : memref<4x8x1xf32, #tpu.memory_space<vmem>>, vector<1x8x1xf32>,
      %147 = vector.extract_strided_slice %10 {offsets = [0, 24], sizes = [8, 8], strides = [1, 1]} : vector<8x32xbf16> to vector<8x8xbf16>
      %148 = vector.extract_strided_slice %12 {offsets = [0, 24], sizes = [8, 8], strides = [1, 1]} : vector<8x32xbf16> to vector<8x8xbf16>
      %149 = vector.extract_strided_slice %14 {offsets = [0, 24], sizes = [8, 8], strides = [1, 1]} : vector<8x32xbf16> to vector<8x8xbf16>
      %cst_78 = arith.constant dense<0.000000e+00> : vector<8x8xf32>
      %150 = tpu.matmul %147, %148, %cst_78 {dimension_numbers = #tpu.dot_dimension_numbers<[1], [1], [0], [0], [0, 0, 1, 0], [], []>} : vector<8x8xbf16>, vector<8x8xbf16>, vector<8x8xf32> -> vector<8x8xf32>
      %cst_79 = arith.constant 0.353553385 : f32
      %151 = vector.broadcast %cst_79 : f32 to vector<8x8xf32>
      %152 = arith.mulf %150, %151 : vector<8x8xf32>
      %cst_80 = arith.constant 3.906250e-03 : f32
      %153 = vector.broadcast %cst_80 : f32 to vector<8x8xf32>
      %154 = arith.mulf %153, %26 : vector<8x8xf32>
      %155 = arith.subf %152, %154 : vector<8x8xf32>
      %cst_81 = arith.constant -1.000000e+30 : f32
      %156 = vector.broadcast %cst_81 : f32 to vector<8x8xf32>
      %157 = arith.select %25, %155, %156 : vector<8x8xi1>, vector<8x8xf32>
      %c3 = arith.constant 3 : index
      %c0_82 = arith.constant 0 : index
      %c0_83 = arith.constant 0 : index
      %158 = vector.load %arg7[%c3, %c0_82, %c0_83] : memref<4x8x1xf32, #tpu.memory_space<vmem>>, vector<1x8x1xf32>
      %159 = vector.shape_cast %158 : vector<1x8x1xf32> to vector<8x1xf32>
      %cst_84 = arith.constant dense<0xFF800000> : vector<8xf32>
      %160 = vector.multi_reduction <maximumf>, %157, %cst_84 [1] : vector<8x8xf32> to vector<8xf32>
      %161 = vector.shape_cast %160 : vector<8xf32> to vector<8x1xf32>
      %162 = arith.maximumf %159, %161 : vector<8x1xf32>
      %163 = arith.subf %159, %162 : vector<8x1xf32>
      %164 = math.exp %163 : vector<8x1xf32>
      %165 = vector.broadcast %162 : vector<8x1xf32> to vector<8x8xf32>
      %166 = arith.subf %157, %165 : vector<8x8xf32>
      %167 = math.exp %166 : vector<8x8xf32>
      %c3_85 = arith.constant 3 : index
      %c0_86 = arith.constant 0 : index
      %c0_87 = arith.constant 0 : index
      %168 = vector.load %arg8[%c3_85, %c0_86, %c0_87] : memref<4x8x1xf32, #tpu.memory_space<vmem>>, vector<1x8x1xf32>
      %169 = vector.shape_cast %168 : vector<1x8x1xf32> to vector<8x1xf32>
      %170 = arith.mulf %164, %169 : vector<8x1xf32>
      %cst_88 = arith.constant dense<0.000000e+00> : vector<8xf32>
      %171 = vector.multi_reduction <add>, %167, %cst_88 [1] : vector<8x8xf32> to vector<8xf32>
      %172 = vector.shape_cast %171 : vector<8xf32> to vector<8x1xf32>
      %173 = arith.addf %170, %172 : vector<8x1xf32>
      %c3_89 = arith.constant 3 : index
      %c0_90 = arith.constant 0 : index
      %c0_91 = arith.constant 0 : index
      %174 = vector.load %arg8[%c3_89, %c0_90, %c0_91] : memref<4x8x1xf32, #tpu.memory_space<vmem>>, vector<1x8x1xf32>
      %175 = vector.shape_cast %174 : vector<1x8x1xf32> to vector<8x1xf32>
      %176 = vector.shape_cast %173 : vector<8x1xf32> to vector<1x8x1xf32>
      tpu.vector_store %arg8[%c3_89, %c0_90, %c0_91], %176 {strides = array<i32>} : memref<4x8x1xf32, #tpu.memory_space<vmem>>, vector<1x8x1xf32>,
      %c0_92 = arith.constant 0 : index
      %c24 = arith.constant 24 : index
      %177 = vector.load %arg9[%c0_92, %c24] : memref<8x32xf32, #tpu.memory_space<vmem>>, vector<8x8xf32>
      %178 = vector.broadcast %164 : vector<8x1xf32> to vector<8x8xf32>
      %179 = arith.mulf %178, %177 : vector<8x8xf32>
      %180 = arith.truncf %167 : vector<8x8xf32> to vector<8x8xbf16>
      %cst_93 = arith.constant dense<0.000000e+00> : vector<8x8xf32>
      %181 = tpu.matmul %180, %149, %cst_93 {dimension_numbers = #tpu.dot_dimension_numbers<[1], [0], [0], [1], [0, 0, 1, 1], [], []>} : vector<8x8xbf16>, vector<8x8xbf16>, vector<8x8xf32> -> vector<8x8xf32>
      %182 = arith.addf %179, %181 : vector<8x8xf32>
      %c0_94 = arith.constant 0 : index
      %c24_95 = arith.constant 24 : index
      %183 = vector.load %arg9[%c0_94, %c24_95] : memref<8x32xf32, #tpu.memory_space<vmem>>, vector<8x8xf32>
      tpu.vector_store %arg9[%c0_94, %c24_95], %182 {strides = array<i32>} : memref<8x32xf32, #tpu.memory_space<vmem>>, vector<8x8xf32>,
      %c3_96 = arith.constant 3 : index
      %c0_97 = arith.constant 0 : index
      %c0_98 = arith.constant 0 : index
      %184 = vector.load %arg7[%c3_96, %c0_97, %c0_98] : memref<4x8x1xf32, #tpu.memory_space<vmem>>, vector<1x8x1xf32>
      %185 = vector.shape_cast %184 : vector<1x8x1xf32> to vector<8x1xf32>
      %186 = vector.shape_cast %162 : vector<8x1xf32> to vector<1x8x1xf32>
      tpu.vector_store %arg7[%c3_96, %c0_97, %c0_98], %186 {strides = array<i32>} : memref<4x8x1xf32, #tpu.memory_space<vmem>>, vector<1x8x1xf32>,
    } else {
    }
    %c0_i32_2 = arith.constant 0 : i32
    %6 = arith.cmpi eq, %arg2, %c0_i32_2 : i32
    %7 = arith.extui %6 : i1 to i32
    %c0_i32_3 = arith.constant 0 : i32
    %8 = arith.cmpi ne, %7, %c0_i32_3 : i32
    scf.if %8 {
      %c0 = arith.constant 0 : index
      %c0_4 = arith.constant 0 : index
      %9 = vector.load %arg9[%c0, %c0_4] : memref<8x32xf32, #tpu.memory_space<vmem>>, vector<8x8xf32>
      %c0_5 = arith.constant 0 : index
      %c0_6 = arith.constant 0 : index
      %c0_7 = arith.constant 0 : index
      %10 = vector.load %arg8[%c0_5, %c0_6, %c0_7] : memref<4x8x1xf32, #tpu.memory_space<vmem>>, vector<1x8x1xf32>
      %11 = vector.shape_cast %10 : vector<1x8x1xf32> to vector<8x1xf32>
      %12 = vector.broadcast %11 : vector<8x1xf32> to vector<8x8xf32>
      %13 = arith.divf %9, %12 : vector<8x8xf32>
      %c0_8 = arith.constant 0 : index
      %c0_9 = arith.constant 0 : index
      %14 = vector.load %arg9[%c0_8, %c0_9] : memref<8x32xf32, #tpu.memory_space<vmem>>, vector<8x8xf32>
      tpu.vector_store %arg9[%c0_8, %c0_9], %13 {strides = array<i32>} : memref<8x32xf32, #tpu.memory_space<vmem>>, vector<8x8xf32>,
      %c0_10 = arith.constant 0 : index
      %c8 = arith.constant 8 : index
      %15 = vector.load %arg9[%c0_10, %c8] : memref<8x32xf32, #tpu.memory_space<vmem>>, vector<8x8xf32>
      %c1 = arith.constant 1 : index
      %c0_11 = arith.constant 0 : index
      %c0_12 = arith.constant 0 : index
      %16 = vector.load %arg8[%c1, %c0_11, %c0_12] : memref<4x8x1xf32, #tpu.memory_space<vmem>>, vector<1x8x1xf32>
      %17 = vector.shape_cast %16 : vector<1x8x1xf32> to vector<8x1xf32>
      %18 = vector.broadcast %17 : vector<8x1xf32> to vector<8x8xf32>
      %19 = arith.divf %15, %18 : vector<8x8xf32>
      %c0_13 = arith.constant 0 : index
      %c8_14 = arith.constant 8 : index
      %20 = vector.load %arg9[%c0_13, %c8_14] : memref<8x32xf32, #tpu.memory_space<vmem>>, vector<8x8xf32>
      tpu.vector_store %arg9[%c0_13, %c8_14], %19 {strides = array<i32>} : memref<8x32xf32, #tpu.memory_space<vmem>>, vector<8x8xf32>,
      %c0_15 = arith.constant 0 : index
      %c16 = arith.constant 16 : index
      %21 = vector.load %arg9[%c0_15, %c16] : memref<8x32xf32, #tpu.memory_space<vmem>>, vector<8x8xf32>
      %c2 = arith.constant 2 : index
      %c0_16 = arith.constant 0 : index
      %c0_17 = arith.constant 0 : index
      %22 = vector.load %arg8[%c2, %c0_16, %c0_17] : memref<4x8x1xf32, #tpu.memory_space<vmem>>, vector<1x8x1xf32>
      %23 = vector.shape_cast %22 : vector<1x8x1xf32> to vector<8x1xf32>
      %24 = vector.broadcast %23 : vector<8x1xf32> to vector<8x8xf32>
      %25 = arith.divf %21, %24 : vector<8x8xf32>
      %c0_18 = arith.constant 0 : index
      %c16_19 = arith.constant 16 : index
      %26 = vector.load %arg9[%c0_18, %c16_19] : memref<8x32xf32, #tpu.memory_space<vmem>>, vector<8x8xf32>
      tpu.vector_store %arg9[%c0_18, %c16_19], %25 {strides = array<i32>} : memref<8x32xf32, #tpu.memory_space<vmem>>, vector<8x8xf32>,
      %c0_20 = arith.constant 0 : index
      %c24 = arith.constant 24 : index
      %27 = vector.load %arg9[%c0_20, %c24] : memref<8x32xf32, #tpu.memory_space<vmem>>, vector<8x8xf32>
      %c3 = arith.constant 3 : index
      %c0_21 = arith.constant 0 : index
      %c0_22 = arith.constant 0 : index
      %28 = vector.load %arg8[%c3, %c0_21, %c0_22] : memref<4x8x1xf32, #tpu.memory_space<vmem>>, vector<1x8x1xf32>
      %29 = vector.shape_cast %28 : vector<1x8x1xf32> to vector<8x1xf32>
      %30 = vector.broadcast %29 : vector<8x1xf32> to vector<8x8xf32>
      %31 = arith.divf %27, %30 : vector<8x8xf32>
      %c0_23 = arith.constant 0 : index
      %c24_24 = arith.constant 24 : index
      %32 = vector.load %arg9[%c0_23, %c24_24] : memref<8x32xf32, #tpu.memory_space<vmem>>, vector<8x8xf32>
      tpu.vector_store %arg9[%c0_23, %c24_24], %31 {strides = array<i32>} : memref<8x32xf32, #tpu.memory_space<vmem>>, vector<8x8xf32>,
      %c0_25 = arith.constant 0 : index
      %c0_26 = arith.constant 0 : index
      %33 = vector.load %arg9[%c0_25, %c0_26] : memref<8x32xf32, #tpu.memory_space<vmem>>, vector<8x32xf32>
      %34 = arith.truncf %33 : vector<8x32xf32> to vector<8x32xbf16>
      %c0_27 = arith.constant 0 : index
      %c0_28 = arith.constant 0 : index
      %c0_29 = arith.constant 0 : index
      %35 = vector.load %arg6[%c0_27, %c0_28, %c0_29] : memref<1x8x32xbf16, #tpu.memory_space<vmem>>, vector<1x8x32xbf16>
      %36 = vector.shape_cast %35 : vector<1x8x32xbf16> to vector<8x32xbf16>
      %37 = vector.shape_cast %34 : vector<8x32xbf16> to vector<1x8x32xbf16>
      tpu.vector_store %arg6[%c0_27, %c0_28, %c0_29], %37 {strides = array<i32>} : memref<1x8x32xbf16, #tpu.memory_space<vmem>>, vector<1x8x32xbf16>,
    } else {
    }
    return
  }
  func.func @transform_0(%arg0: i32, %arg1: i32, %arg2: i32) -> (i32, i32, i32) {
    %c0_i32 = arith.constant 0 : i32
    %c0_i32_0 = arith.constant 0 : i32
    return %arg0, %arg1, %c0_i32 : i32, i32, i32
  }
  func.func @transform_1(%arg0: i32, %arg1: i32, %arg2: i32) -> (i32, i32, i32) {
    %0 = arith.minsi %arg2, %arg1 : i32
    %c0_i32 = arith.constant 0 : i32
    %c0_i32_0 = arith.constant 0 : i32
    return %arg0, %0, %c0_i32 : i32, i32, i32
  }
  func.func @transform_2(%arg0: i32, %arg1: i32, %arg2: i32) -> (i32, i32, i32) {
    %0 = arith.minsi %arg2, %arg1 : i32
    %c0_i32 = arith.constant 0 : i32
    %c0_i32_0 = arith.constant 0 : i32
    return %arg0, %0, %c0_i32 : i32, i32, i32
  }
  func.func @transform_3(%arg0: i32, %arg1: i32, %arg2: i32) -> (i32, i32, i32) {
    %c0_i32 = arith.constant 0 : i32
    %c0_i32_0 = arith.constant 0 : i32
    return %arg0, %arg1, %c0_i32 : i32, i32, i32
  }
}

module attributes {stable_mosaic.version = 11 : i64} {
  func.func @_ln_qkv_kernel(%arg0: i32, %arg1: i32, %arg2: memref<1x8x32xbf16, #tpu.memory_space<vmem>>, %arg3: memref<1x32xf32, #tpu.memory_space<vmem>>, %arg4: memref<1x32xf32, #tpu.memory_space<vmem>>, %arg5: memref<32x96xbf16, #tpu.memory_space<vmem>>, %arg6: memref<1x96xf32, #tpu.memory_space<vmem>>, %arg7: memref<1x8x32xbf16, #tpu.memory_space<vmem>>, %arg8: memref<1x8x32xbf16, #tpu.memory_space<vmem>>, %arg9: memref<1x8x32xbf16, #tpu.memory_space<vmem>>) attributes {dimension_semantics = [#tpu.dimension_semantics<parallel>, #tpu.dimension_semantics<parallel>], iteration_bounds = array<i64: 2, 1>, scalar_prefetch = 0 : i64, scratch_operands = 0 : i64, tpu.core_type = #tpu.core_type<tc>, window_params = [{transform_indices = @transform_0, window_bounds = array<i64: 1, 8, 32>}, {pipeline_mode = #tpu.pipeline_mode<synchronous>, transform_indices = @transform_1, window_bounds = array<i64: 1, 32>}, {pipeline_mode = #tpu.pipeline_mode<synchronous>, transform_indices = @transform_2, window_bounds = array<i64: 1, 32>}, {pipeline_mode = #tpu.pipeline_mode<synchronous>, transform_indices = @transform_3, window_bounds = array<i64: 32, 96>}, {pipeline_mode = #tpu.pipeline_mode<synchronous>, transform_indices = @transform_4, window_bounds = array<i64: 1, 96>}, {transform_indices = @transform_5, window_bounds = array<i64: 1, 8, 32>}, {transform_indices = @transform_6, window_bounds = array<i64: 1, 8, 32>}, {transform_indices = @transform_7, window_bounds = array<i64: 1, 8, 32>}]} {
    %c0 = arith.constant 0 : index
    %c0_0 = arith.constant 0 : index
    %c0_1 = arith.constant 0 : index
    %0 = vector.load %arg2[%c0, %c0_0, %c0_1] : memref<1x8x32xbf16, #tpu.memory_space<vmem>>, vector<1x8x32xbf16>
    %1 = vector.shape_cast %0 : vector<1x8x32xbf16> to vector<8x32xbf16>
    %2 = arith.extf %1 : vector<8x32xbf16> to vector<8x32xf32>
    %c0_2 = arith.constant 0 : index
    %c0_3 = arith.constant 0 : index
    %3 = vector.load %arg3[%c0_2, %c0_3] : memref<1x32xf32, #tpu.memory_space<vmem>>, vector<1x32xf32>
    %c0_4 = arith.constant 0 : index
    %c0_5 = arith.constant 0 : index
    %4 = vector.load %arg4[%c0_4, %c0_5] : memref<1x32xf32, #tpu.memory_space<vmem>>, vector<1x32xf32>
    %cst = arith.constant dense<0.000000e+00> : vector<8xf32>
    %5 = vector.multi_reduction <add>, %2, %cst [1] : vector<8x32xf32> to vector<8xf32>
    %6 = vector.shape_cast %5 : vector<8xf32> to vector<8x1xf32>
    %cst_6 = arith.constant 3.200000e+01 : f32
    %7 = vector.broadcast %cst_6 : f32 to vector<8x1xf32>
    %8 = arith.divf %6, %7 : vector<8x1xf32>
    %9 = vector.broadcast %8 : vector<8x1xf32> to vector<8x32xf32>
    %10 = arith.subf %2, %9 : vector<8x32xf32>
    %11 = arith.mulf %10, %10 : vector<8x32xf32>
    %cst_7 = arith.constant dense<0.000000e+00> : vector<8xf32>
    %12 = vector.multi_reduction <add>, %11, %cst_7 [1] : vector<8x32xf32> to vector<8xf32>
    %13 = vector.shape_cast %12 : vector<8xf32> to vector<8x1xf32>
    %cst_8 = arith.constant 3.200000e+01 : f32
    %14 = vector.broadcast %cst_8 : f32 to vector<8x1xf32>
    %15 = arith.divf %13, %14 : vector<8x1xf32>
    %cst_9 = arith.constant 9.99999974E-6 : f32
    %16 = vector.broadcast %cst_9 : f32 to vector<8x1xf32>
    %17 = arith.addf %15, %16 : vector<8x1xf32>
    %18 = math.rsqrt %17 : vector<8x1xf32>
    %19 = vector.broadcast %18 : vector<8x1xf32> to vector<8x32xf32>
    %20 = arith.mulf %10, %19 : vector<8x32xf32>
    %21 = vector.broadcast %3 : vector<1x32xf32> to vector<8x32xf32>
    %22 = arith.mulf %20, %21 : vector<8x32xf32>
    %23 = vector.broadcast %4 : vector<1x32xf32> to vector<8x32xf32>
    %24 = arith.addf %22, %23 : vector<8x32xf32>
    %25 = arith.truncf %24 : vector<8x32xf32> to vector<8x32xbf16>
    %c0_10 = arith.constant 0 : index
    %c0_11 = arith.constant 0 : index
    %26 = vector.load %arg5[%c0_10, %c0_11] : memref<32x96xbf16, #tpu.memory_space<vmem>>, vector<32x96xbf16>
    %cst_12 = arith.constant dense<0.000000e+00> : vector<8x96xf32>
    %27 = tpu.matmul %25, %26, %cst_12 {dimension_numbers = #tpu.dot_dimension_numbers<[1], [0], [0], [1], [0, 0, 1, 1], [], []>} : vector<8x32xbf16>, vector<32x96xbf16>, vector<8x96xf32> -> vector<8x96xf32>
    %c0_13 = arith.constant 0 : index
    %c0_14 = arith.constant 0 : index
    %28 = vector.load %arg6[%c0_13, %c0_14] : memref<1x96xf32, #tpu.memory_space<vmem>>, vector<1x96xf32>
    %29 = vector.broadcast %28 : vector<1x96xf32> to vector<8x96xf32>
    %30 = arith.addf %27, %29 : vector<8x96xf32>
    %31 = vector.extract_strided_slice %30 {offsets = [0, 0], sizes = [8, 32], strides = [1, 1]} : vector<8x96xf32> to vector<8x32xf32>
    %32 = arith.truncf %31 : vector<8x32xf32> to vector<8x32xbf16>
    %c0_15 = arith.constant 0 : index
    %c0_16 = arith.constant 0 : index
    %c0_17 = arith.constant 0 : index
    %33 = vector.load %arg7[%c0_15, %c0_16, %c0_17] : memref<1x8x32xbf16, #tpu.memory_space<vmem>>, vector<1x8x32xbf16>
    %34 = vector.shape_cast %33 : vector<1x8x32xbf16> to vector<8x32xbf16>
    %35 = vector.shape_cast %32 : vector<8x32xbf16> to vector<1x8x32xbf16>
    tpu.vector_store %arg7[%c0_15, %c0_16, %c0_17], %35 {strides = array<i32>} : memref<1x8x32xbf16, #tpu.memory_space<vmem>>, vector<1x8x32xbf16>,
    %36 = vector.extract_strided_slice %30 {offsets = [0, 32], sizes = [8, 32], strides = [1, 1]} : vector<8x96xf32> to vector<8x32xf32>
    %37 = arith.truncf %36 : vector<8x32xf32> to vector<8x32xbf16>
    %c0_18 = arith.constant 0 : index
    %c0_19 = arith.constant 0 : index
    %c0_20 = arith.constant 0 : index
    %38 = vector.load %arg8[%c0_18, %c0_19, %c0_20] : memref<1x8x32xbf16, #tpu.memory_space<vmem>>, vector<1x8x32xbf16>
    %39 = vector.shape_cast %38 : vector<1x8x32xbf16> to vector<8x32xbf16>
    %40 = vector.shape_cast %37 : vector<8x32xbf16> to vector<1x8x32xbf16>
    tpu.vector_store %arg8[%c0_18, %c0_19, %c0_20], %40 {strides = array<i32>} : memref<1x8x32xbf16, #tpu.memory_space<vmem>>, vector<1x8x32xbf16>,
    %41 = vector.extract_strided_slice %30 {offsets = [0, 64], sizes = [8, 32], strides = [1, 1]} : vector<8x96xf32> to vector<8x32xf32>
    %42 = arith.truncf %41 : vector<8x32xf32> to vector<8x32xbf16>
    %c0_21 = arith.constant 0 : index
    %c0_22 = arith.constant 0 : index
    %c0_23 = arith.constant 0 : index
    %43 = vector.load %arg9[%c0_21, %c0_22, %c0_23] : memref<1x8x32xbf16, #tpu.memory_space<vmem>>, vector<1x8x32xbf16>
    %44 = vector.shape_cast %43 : vector<1x8x32xbf16> to vector<8x32xbf16>
    %45 = vector.shape_cast %42 : vector<8x32xbf16> to vector<1x8x32xbf16>
    tpu.vector_store %arg9[%c0_21, %c0_22, %c0_23], %45 {strides = array<i32>} : memref<1x8x32xbf16, #tpu.memory_space<vmem>>, vector<1x8x32xbf16>,
    return
  }
  func.func @transform_0(%arg0: i32, %arg1: i32) -> (i32, i32, i32) {
    %c0_i32 = arith.constant 0 : i32
    %c0_i32_0 = arith.constant 0 : i32
    return %arg0, %arg1, %c0_i32 : i32, i32, i32
  }
  func.func @transform_1(%arg0: i32, %arg1: i32) -> (i32, i32) {
    %c0_i32 = arith.constant 0 : i32
    %c0_i32_0 = arith.constant 0 : i32
    %c0_i32_1 = arith.constant 0 : i32
    return %c0_i32, %c0_i32_0 : i32, i32
  }
  func.func @transform_2(%arg0: i32, %arg1: i32) -> (i32, i32) {
    %c0_i32 = arith.constant 0 : i32
    %c0_i32_0 = arith.constant 0 : i32
    %c0_i32_1 = arith.constant 0 : i32
    return %c0_i32, %c0_i32_0 : i32, i32
  }
  func.func @transform_3(%arg0: i32, %arg1: i32) -> (i32, i32) {
    %c0_i32 = arith.constant 0 : i32
    %c0_i32_0 = arith.constant 0 : i32
    %c0_i32_1 = arith.constant 0 : i32
    return %c0_i32, %c0_i32_0 : i32, i32
  }
  func.func @transform_4(%arg0: i32, %arg1: i32) -> (i32, i32) {
    %c0_i32 = arith.constant 0 : i32
    %c0_i32_0 = arith.constant 0 : i32
    %c0_i32_1 = arith.constant 0 : i32
    return %c0_i32, %c0_i32_0 : i32, i32
  }
  func.func @transform_5(%arg0: i32, %arg1: i32) -> (i32, i32, i32) {
    %c0_i32 = arith.constant 0 : i32
    %c0_i32_0 = arith.constant 0 : i32
    return %arg0, %arg1, %c0_i32 : i32, i32, i32
  }
  func.func @transform_6(%arg0: i32, %arg1: i32) -> (i32, i32, i32) {
    %c0_i32 = arith.constant 0 : i32
    %c0_i32_0 = arith.constant 0 : i32
    return %arg0, %arg1, %c0_i32 : i32, i32, i32
  }
  func.func @transform_7(%arg0: i32, %arg1: i32) -> (i32, i32, i32) {
    %c0_i32 = arith.constant 0 : i32
    %c0_i32_0 = arith.constant 0 : i32
    return %arg0, %arg1, %c0_i32 : i32, i32, i32
  }
}

module attributes {stable_mosaic.version = 11 : i64} {
  func.func @_out_ffn_kernel(%arg0: i32, %arg1: i32, %arg2: i32, %arg3: memref<1x8x32xbf16, #tpu.memory_space<vmem>>, %arg4: memref<1x8x32xbf16, #tpu.memory_space<vmem>>, %arg5: memref<32x32xbf16, #tpu.memory_space<vmem>>, %arg6: memref<1x32xf32, #tpu.memory_space<vmem>>, %arg7: memref<1x32xf32, #tpu.memory_space<vmem>>, %arg8: memref<1x32xf32, #tpu.memory_space<vmem>>, %arg9: memref<32x128xbf16, #tpu.memory_space<vmem>>, %arg10: memref<1x128xf32, #tpu.memory_space<vmem>>, %arg11: memref<128x32xbf16, #tpu.memory_space<vmem>>, %arg12: memref<1x32xf32, #tpu.memory_space<vmem>>, %arg13: memref<1x8x32xbf16, #tpu.memory_space<vmem>>, %arg14: memref<8x32xbf16, #tpu.memory_space<vmem>>, %arg15: memref<8x32xf32, #tpu.memory_space<vmem>>) attributes {dimension_semantics = [#tpu.dimension_semantics<parallel>, #tpu.dimension_semantics<parallel>, #tpu.dimension_semantics<arbitrary>], iteration_bounds = array<i64: 2, 1, 1>, scalar_prefetch = 0 : i64, scratch_operands = 2 : i64, tpu.core_type = #tpu.core_type<tc>, window_params = [{transform_indices = @transform_0, window_bounds = array<i64: 1, 8, 32>}, {transform_indices = @transform_1, window_bounds = array<i64: 1, 8, 32>}, {pipeline_mode = #tpu.pipeline_mode<synchronous>, transform_indices = @transform_2, window_bounds = array<i64: 32, 32>}, {pipeline_mode = #tpu.pipeline_mode<synchronous>, transform_indices = @transform_3, window_bounds = array<i64: 1, 32>}, {pipeline_mode = #tpu.pipeline_mode<synchronous>, transform_indices = @transform_4, window_bounds = array<i64: 1, 32>}, {pipeline_mode = #tpu.pipeline_mode<synchronous>, transform_indices = @transform_5, window_bounds = array<i64: 1, 32>}, {transform_indices = @transform_6, window_bounds = array<i64: 32, 128>}, {transform_indices = @transform_7, window_bounds = array<i64: 1, 128>}, {transform_indices = @transform_8, window_bounds = array<i64: 128, 32>}, {pipeline_mode = #tpu.pipeline_mode<synchronous>, transform_indices = @transform_9, window_bounds = array<i64: 1, 32>}, {transform_indices = @transform_10, window_bounds = array<i64: 1, 8, 32>}]} {
    %c0_i32 = arith.constant 0 : i32
    %0 = arith.cmpi eq, %arg2, %c0_i32 : i32
    %1 = arith.extui %0 : i1 to i32
    %c0_i32_0 = arith.constant 0 : i32
    %2 = arith.cmpi ne, %1, %c0_i32_0 : i32
    scf.if %2 {
      %c0_19 = arith.constant 0 : index
      %c0_20 = arith.constant 0 : index
      %c0_21 = arith.constant 0 : index
      %31 = vector.load %arg4[%c0_19, %c0_20, %c0_21] : memref<1x8x32xbf16, #tpu.memory_space<vmem>>, vector<1x8x32xbf16>
      %32 = vector.shape_cast %31 : vector<1x8x32xbf16> to vector<8x32xbf16>
      %c0_22 = arith.constant 0 : index
      %c0_23 = arith.constant 0 : index
      %33 = vector.load %arg5[%c0_22, %c0_23] : memref<32x32xbf16, #tpu.memory_space<vmem>>, vector<32x32xbf16>
      %cst_24 = arith.constant dense<0.000000e+00> : vector<8x32xf32>
      %34 = tpu.matmul %32, %33, %cst_24 {dimension_numbers = #tpu.dot_dimension_numbers<[1], [0], [0], [1], [0, 0, 1, 1], [], []>} : vector<8x32xbf16>, vector<32x32xbf16>, vector<8x32xf32> -> vector<8x32xf32>
      %c0_25 = arith.constant 0 : index
      %c0_26 = arith.constant 0 : index
      %35 = vector.load %arg6[%c0_25, %c0_26] : memref<1x32xf32, #tpu.memory_space<vmem>>, vector<1x32xf32>
      %36 = vector.broadcast %35 : vector<1x32xf32> to vector<8x32xf32>
      %37 = arith.addf %34, %36 : vector<8x32xf32>
      %c0_27 = arith.constant 0 : index
      %c0_28 = arith.constant 0 : index
      %c0_29 = arith.constant 0 : index
      %38 = vector.load %arg3[%c0_27, %c0_28, %c0_29] : memref<1x8x32xbf16, #tpu.memory_space<vmem>>, vector<1x8x32xbf16>
      %39 = vector.shape_cast %38 : vector<1x8x32xbf16> to vector<8x32xbf16>
      %40 = arith.extf %39 : vector<8x32xbf16> to vector<8x32xf32>
      %41 = arith.addf %40, %37 : vector<8x32xf32>
      %c0_30 = arith.constant 0 : index
      %c0_31 = arith.constant 0 : index
      %42 = vector.load %arg7[%c0_30, %c0_31] : memref<1x32xf32, #tpu.memory_space<vmem>>, vector<1x32xf32>
      %c0_32 = arith.constant 0 : index
      %c0_33 = arith.constant 0 : index
      %43 = vector.load %arg8[%c0_32, %c0_33] : memref<1x32xf32, #tpu.memory_space<vmem>>, vector<1x32xf32>
      %cst_34 = arith.constant dense<0.000000e+00> : vector<8xf32>
      %44 = vector.multi_reduction <add>, %41, %cst_34 [1] : vector<8x32xf32> to vector<8xf32>
      %45 = vector.shape_cast %44 : vector<8xf32> to vector<8x1xf32>
      %cst_35 = arith.constant 3.200000e+01 : f32
      %46 = vector.broadcast %cst_35 : f32 to vector<8x1xf32>
      %47 = arith.divf %45, %46 : vector<8x1xf32>
      %48 = vector.broadcast %47 : vector<8x1xf32> to vector<8x32xf32>
      %49 = arith.subf %41, %48 : vector<8x32xf32>
      %50 = arith.mulf %49, %49 : vector<8x32xf32>
      %cst_36 = arith.constant dense<0.000000e+00> : vector<8xf32>
      %51 = vector.multi_reduction <add>, %50, %cst_36 [1] : vector<8x32xf32> to vector<8xf32>
      %52 = vector.shape_cast %51 : vector<8xf32> to vector<8x1xf32>
      %cst_37 = arith.constant 3.200000e+01 : f32
      %53 = vector.broadcast %cst_37 : f32 to vector<8x1xf32>
      %54 = arith.divf %52, %53 : vector<8x1xf32>
      %cst_38 = arith.constant 9.99999974E-6 : f32
      %55 = vector.broadcast %cst_38 : f32 to vector<8x1xf32>
      %56 = arith.addf %54, %55 : vector<8x1xf32>
      %57 = math.rsqrt %56 : vector<8x1xf32>
      %58 = vector.broadcast %57 : vector<8x1xf32> to vector<8x32xf32>
      %59 = arith.mulf %49, %58 : vector<8x32xf32>
      %60 = vector.broadcast %42 : vector<1x32xf32> to vector<8x32xf32>
      %61 = arith.mulf %59, %60 : vector<8x32xf32>
      %62 = vector.broadcast %43 : vector<1x32xf32> to vector<8x32xf32>
      %63 = arith.addf %61, %62 : vector<8x32xf32>
      %64 = arith.truncf %63 : vector<8x32xf32> to vector<8x32xbf16>
      %c0_39 = arith.constant 0 : index
      %c0_40 = arith.constant 0 : index
      %65 = vector.load %arg14[%c0_39, %c0_40] : memref<8x32xbf16, #tpu.memory_space<vmem>>, vector<8x32xbf16>
      tpu.vector_store %arg14[%c0_39, %c0_40], %64 {strides = array<i32>} : memref<8x32xbf16, #tpu.memory_space<vmem>>, vector<8x32xbf16>,
      %c0_41 = arith.constant 0 : index
      %c0_42 = arith.constant 0 : index
      %66 = vector.load %arg12[%c0_41, %c0_42] : memref<1x32xf32, #tpu.memory_space<vmem>>, vector<1x32xf32>
      %67 = vector.broadcast %66 : vector<1x32xf32> to vector<8x32xf32>
      %68 = arith.addf %41, %67 : vector<8x32xf32>
      %c0_43 = arith.constant 0 : index
      %c0_44 = arith.constant 0 : index
      %69 = vector.load %arg15[%c0_43, %c0_44] : memref<8x32xf32, #tpu.memory_space<vmem>>, vector<8x32xf32>
      tpu.vector_store %arg15[%c0_43, %c0_44], %68 {strides = array<i32>} : memref<8x32xf32, #tpu.memory_space<vmem>>, vector<8x32xf32>,
    } else {
    }
    %c0 = arith.constant 0 : index
    %c0_1 = arith.constant 0 : index
    %3 = vector.load %arg14[%c0, %c0_1] : memref<8x32xbf16, #tpu.memory_space<vmem>>, vector<8x32xbf16>
    %c0_2 = arith.constant 0 : index
    %c0_3 = arith.constant 0 : index
    %4 = vector.load %arg9[%c0_2, %c0_3] : memref<32x128xbf16, #tpu.memory_space<vmem>>, vector<32x128xbf16>
    %cst = arith.constant dense<0.000000e+00> : vector<8x128xf32>
    %5 = tpu.matmul %3, %4, %cst {dimension_numbers = #tpu.dot_dimension_numbers<[1], [0], [0], [1], [0, 0, 1, 1], [], []>} : vector<8x32xbf16>, vector<32x128xbf16>, vector<8x128xf32> -> vector<8x128xf32>
    %c0_4 = arith.constant 0 : index
    %c0_5 = arith.constant 0 : index
    %6 = vector.load %arg10[%c0_4, %c0_5] : memref<1x128xf32, #tpu.memory_space<vmem>>, vector<1x128xf32>
    %7 = vector.broadcast %6 : vector<1x128xf32> to vector<8x128xf32>
    %8 = arith.addf %5, %7 : vector<8x128xf32>
    %cst_6 = arith.constant 5.000000e-01 : f32
    %9 = vector.broadcast %cst_6 : f32 to vector<8x128xf32>
    %10 = arith.mulf %9, %8 : vector<8x128xf32>
    %cst_7 = arith.constant 4.471500e-02 : f32
    %11 = vector.broadcast %cst_7 : f32 to vector<8x128xf32>
    %12 = arith.mulf %11, %8 : vector<8x128xf32>
    %13 = arith.mulf %12, %8 : vector<8x128xf32>
    %14 = arith.mulf %13, %8 : vector<8x128xf32>
    %15 = arith.addf %8, %14 : vector<8x128xf32>
    %cst_8 = arith.constant 0.797884583 : f32
    %16 = vector.broadcast %cst_8 : f32 to vector<8x128xf32>
    %17 = arith.mulf %16, %15 : vector<8x128xf32>
    %18 = math.tanh %17 : vector<8x128xf32>
    %cst_9 = arith.constant 1.000000e+00 : f32
    %19 = vector.broadcast %cst_9 : f32 to vector<8x128xf32>
    %20 = arith.addf %19, %18 : vector<8x128xf32>
    %21 = arith.mulf %10, %20 : vector<8x128xf32>
    %c0_10 = arith.constant 0 : index
    %c0_11 = arith.constant 0 : index
    %22 = vector.load %arg15[%c0_10, %c0_11] : memref<8x32xf32, #tpu.memory_space<vmem>>, vector<8x32xf32>
    %23 = arith.truncf %21 : vector<8x128xf32> to vector<8x128xbf16>
    %c0_12 = arith.constant 0 : index
    %c0_13 = arith.constant 0 : index
    %24 = vector.load %arg11[%c0_12, %c0_13] : memref<128x32xbf16, #tpu.memory_space<vmem>>, vector<128x32xbf16>
    %cst_14 = arith.constant dense<0.000000e+00> : vector<8x32xf32>
    %25 = tpu.matmul %23, %24, %cst_14 {dimension_numbers = #tpu.dot_dimension_numbers<[1], [0], [0], [1], [0, 0, 1, 1], [], []>} : vector<8x128xbf16>, vector<128x32xbf16>, vector<8x32xf32> -> vector<8x32xf32>
    %26 = arith.addf %22, %25 : vector<8x32xf32>
    %c0_15 = arith.constant 0 : index
    %c0_16 = arith.constant 0 : index
    %27 = vector.load %arg15[%c0_15, %c0_16] : memref<8x32xf32, #tpu.memory_space<vmem>>, vector<8x32xf32>
    tpu.vector_store %arg15[%c0_15, %c0_16], %26 {strides = array<i32>} : memref<8x32xf32, #tpu.memory_space<vmem>>, vector<8x32xf32>,
    %c0_i32_17 = arith.constant 0 : i32
    %28 = arith.cmpi eq, %arg2, %c0_i32_17 : i32
    %29 = arith.extui %28 : i1 to i32
    %c0_i32_18 = arith.constant 0 : i32
    %30 = arith.cmpi ne, %29, %c0_i32_18 : i32
    scf.if %30 {
      %c0_19 = arith.constant 0 : index
      %c0_20 = arith.constant 0 : index
      %31 = vector.load %arg15[%c0_19, %c0_20] : memref<8x32xf32, #tpu.memory_space<vmem>>, vector<8x32xf32>
      %32 = arith.truncf %31 : vector<8x32xf32> to vector<8x32xbf16>
      %c0_21 = arith.constant 0 : index
      %c0_22 = arith.constant 0 : index
      %c0_23 = arith.constant 0 : index
      %33 = vector.load %arg13[%c0_21, %c0_22, %c0_23] : memref<1x8x32xbf16, #tpu.memory_space<vmem>>, vector<1x8x32xbf16>
      %34 = vector.shape_cast %33 : vector<1x8x32xbf16> to vector<8x32xbf16>
      %35 = vector.shape_cast %32 : vector<8x32xbf16> to vector<1x8x32xbf16>
      tpu.vector_store %arg13[%c0_21, %c0_22, %c0_23], %35 {strides = array<i32>} : memref<1x8x32xbf16, #tpu.memory_space<vmem>>, vector<1x8x32xbf16>,
    } else {
    }
    return
  }
  func.func @transform_0(%arg0: i32, %arg1: i32, %arg2: i32) -> (i32, i32, i32) {
    %c0_i32 = arith.constant 0 : i32
    %c0_i32_0 = arith.constant 0 : i32
    return %arg0, %arg1, %c0_i32 : i32, i32, i32
  }
  func.func @transform_1(%arg0: i32, %arg1: i32, %arg2: i32) -> (i32, i32, i32) {
    %c0_i32 = arith.constant 0 : i32
    %c0_i32_0 = arith.constant 0 : i32
    return %arg0, %arg1, %c0_i32 : i32, i32, i32
  }
  func.func @transform_2(%arg0: i32, %arg1: i32, %arg2: i32) -> (i32, i32) {
    %c0_i32 = arith.constant 0 : i32
    %c0_i32_0 = arith.constant 0 : i32
    %c0_i32_1 = arith.constant 0 : i32
    return %c0_i32, %c0_i32_0 : i32, i32
  }
  func.func @transform_3(%arg0: i32, %arg1: i32, %arg2: i32) -> (i32, i32) {
    %c0_i32 = arith.constant 0 : i32
    %c0_i32_0 = arith.constant 0 : i32
    %c0_i32_1 = arith.constant 0 : i32
    return %c0_i32, %c0_i32_0 : i32, i32
  }
  func.func @transform_4(%arg0: i32, %arg1: i32, %arg2: i32) -> (i32, i32) {
    %c0_i32 = arith.constant 0 : i32
    %c0_i32_0 = arith.constant 0 : i32
    %c0_i32_1 = arith.constant 0 : i32
    return %c0_i32, %c0_i32_0 : i32, i32
  }
  func.func @transform_5(%arg0: i32, %arg1: i32, %arg2: i32) -> (i32, i32) {
    %c0_i32 = arith.constant 0 : i32
    %c0_i32_0 = arith.constant 0 : i32
    %c0_i32_1 = arith.constant 0 : i32
    return %c0_i32, %c0_i32_0 : i32, i32
  }
  func.func @transform_6(%arg0: i32, %arg1: i32, %arg2: i32) -> (i32, i32) {
    %c0_i32 = arith.constant 0 : i32
    %c0_i32_0 = arith.constant 0 : i32
    return %c0_i32, %arg2 : i32, i32
  }
  func.func @transform_7(%arg0: i32, %arg1: i32, %arg2: i32) -> (i32, i32) {
    %c0_i32 = arith.constant 0 : i32
    %c0_i32_0 = arith.constant 0 : i32
    return %c0_i32, %arg2 : i32, i32
  }
  func.func @transform_8(%arg0: i32, %arg1: i32, %arg2: i32) -> (i32, i32) {
    %c0_i32 = arith.constant 0 : i32
    %c0_i32_0 = arith.constant 0 : i32
    return %arg2, %c0_i32 : i32, i32
  }
  func.func @transform_9(%arg0: i32, %arg1: i32, %arg2: i32) -> (i32, i32) {
    %c0_i32 = arith.constant 0 : i32
    %c0_i32_0 = arith.constant 0 : i32
    %c0_i32_1 = arith.constant 0 : i32
    return %c0_i32, %c0_i32_0 : i32, i32
  }
  func.func @transform_10(%arg0: i32, %arg1: i32, %arg2: i32) -> (i32, i32, i32) {
    %c0_i32 = arith.constant 0 : i32
    %c0_i32_0 = arith.constant 0 : i32
    return %arg0, %arg1, %c0_i32 : i32, i32, i32
  }
}

</mosaic_0001>

<bundles_post_ra>
// kernel: alibi_transformer_forward.6
= control target key start
LH: loop header
LB: loop body
LE: loop exit
PB: predicated region body
PF: predicated region fallthrough
CT: control target
= control target key end

     0   :  { %s713_s24 = smov 0   ;;  %s715_s25 = smov 0   ;;  %s776_s0 = inlined_call_operand.vmem [shape: bf16[2,8,32], index: 0, kind: input, shape index: {}]   ;;  %s777_s1 = inlined_call_operand.vmem [shape: f32[1,32], index: 1, kind: input, shape index: {}]   ;;  %s778_s2 = inlined_call_operand.vmem [shape: f32[1,32], index: 2, kind: input, shape index: {}]   ;;  %s779_s3 = inlined_call_operand.vmem [shape: bf16[32,96], index: 3, kind: input, shape index: {}]   ;;  %s780_s4 = inlined_call_operand.vmem [shape: f32[1,96], index: 4, kind: input, shape index: {}]   ;;  %s781_s5 = inlined_call_operand.vmem [shape: bf16[2,8,32], index: 5, kind: output, shape index: {0}]   ;;  %s782_s6 = inlined_call_operand.vmem [shape: bf16[2,8,32], index: 6, kind: output, shape index: {1}]   ;;  %s783_s7 = inlined_call_operand.vmem [shape: bf16[2,8,32], index: 7, kind: output, shape index: {2}]  }
   0x1   :  { %s717_s26 = smov 0  }
   0x2 LB: > { %s30_s27 = sadd.s32 1, %s664_s25  ;;  %p594_p0 = scmp.ge.s32.totalorder %s668_s26, 1  ;;  %s668_s26 = sphi %s717_s26, %s18_s26   ;;  %s664_s25 = sphi %s715_s25, %s785_s25   ;;  %s660_s24 = sphi %s713_s24, %s784_s24  }
   0x3   : > { %p32_p1 = scmp.ge.s32.totalorder %s30_s27, 2  ;;  %p264_p2 = scmp.lt.s32.totalorder %s668_s26, 3 }
   0x5   : > { %s787_s27 = smov (%p32_p1, %s30_s27), 0  ;;  %p265_p3 = pnand %p594_p0, %p264_p2 }
   0x6   : > { %p314_p4 = scmp.lt.s32.totalorder (!%p265_p3), %s660_s24, 1  ;;  %s671_s22 = smov (!%p265_p3), 96  }
   0x7   : > { %268 = sbr.rel (%p265_p3) target bundleno = 542 (0x21e), region = 40  ;;  %s672_s23 = smov (!%p265_p3), 64  }
   0xc   : > { %s789_s24 = smov (!%p314_p4, %s660_s24), 1  ;;  %vm347_vm0 = vcmask 261120   ;;  %v670_v3 = vmov 32.0   ;;  %v611_v15 = vld [vmem:[%s779_s3 + $0x8] sm:$0xff]  ;;  %v610_v16 = vld [vmem:[%s779_s3] sm:$0xff]  ;;  %vm423_vm5 = vcmask 257024  }
   0xd   : > { %s731_s28 = sshll.u32 %s789_s24, 2  ;;  %642 = vrcp.f32 %v670_v3  ;;  %415 = vmatpush.bf16.msra.mxu0 %v611_v15  ;;  %v639_v26 = vld [vmem:[%s777_s1] ss:$0 sm:$0xff] }
   0xe   : > { %s320_s8 = scalar_lea.vmem %s776_s0, %s731_s28  ;;  %v640_v29 = vld [vmem:[%s778_s2] ss:$0 sm:$0xff]  ;;  %s327_s21 = scalar_lea.vmem %s781_s5, %s731_s28 }
   0xf   : > { %v343_v0 = vld [vmem:[%s320_s8] sm:$0xf]  ;;  %s334_s30 = scalar_lea.vmem %s782_s6, %s731_s28  ;;  %s341_s10 = scalar_lea.vmem %s783_s7, %s731_s28 }
  0x10   : > { %v344_v1 = vunpack.c.l.bf16 %v343_v0  ;;  %v641_v33 = vld [vmem:[%s780_s4] ss:$0 sm:$0xff] }
  0x11   : > { %416 = vmatpush.bf16.msra.mxu0 %v610_v16 }
  0x12   : > { %v348_v2 = vsel %vm347_vm0, %v344_v1, 0.0 }
  0x13   : > { %349 = vadd.xlane.f32.xlu0 %v348_v2  ;;  %v643_v4 = vpop.eup %642 }
  0x14   : > { %v352_v5 = vmul.f32 32.0, %v643_v4  ;;  %vm356_vm1 = vweird.f32 %v643_v4 }
  0x16   : > { %v353_v6 = vsub.f32 1.0, %v352_v5 }
  0x18   : > { %v354_v7 = vmul.f32 %v643_v4, %v353_v6 }
  0x1a   : > { %v355_v8 = vadd.f32 %v643_v4, %v354_v7 }
  0x1c   : > { %v357_v9 = vsel %vm356_vm1, %v643_v4, %v355_v8 }
  0x86   : > { %v350_v10 = vpop.xlane.xlu0 %349 }
  0x87   : > { %v358_v11 = vmul.f32 %v357_v9, %v350_v10 }
  0x89   : > { %v359_v12 = vsub.f32 %v344_v1, %v358_v11 }
  0x8b   : > { %v360_v13 = vmul.f32 %v359_v12, %v359_v12 }
  0x8d   : > { %v361_v14 = vsel %vm347_vm0, %v360_v13, 0.0 }
  0x8e   : > { %362 = vadd.xlane.f32.xlu0 %v361_v14 }
 0x101   : > { %v363_v17 = vpop.xlane.xlu0 %362 }
 0x102   : > { %v364_v18 = vmul.f32 %v363_v17, %v357_v9 }
 0x104   : > { %v365_v19 = vadd.f32 1e-05, %v364_v18 }
 0x106   : > { %644 = vrsqrt.f32 %v365_v19  ;;  %vm372_vm3 = vweird.f32 %v365_v19 }
 0x10c   : > { %v645_v20 = vpop.eup %644 }
 0x10d   : > { %v367_v21 = vmul.f32 %v645_v20, %v365_v19  ;;  %vm373_vm2 = vweird.f32 %v645_v20 }
 0x10e   : > { %vm374_vm4 = vmor %vm372_vm3, %vm373_vm2 }
 0x10f   : > { %v368_v22 = vmul.f32 %v645_v20, %v367_v21 }
 0x111   : > { %v369_v23 = vmul.f32 0.5, %v368_v22 }
 0x113   : > { %v370_v24 = vsub.f32 1.5, %v369_v23 }
 0x115   : > { %v371_v25 = vmul.f32 %v645_v20, %v370_v24 }
 0x117   : > { %v375_v27 = vsel %vm374_vm4, %v645_v20, %v371_v25 }
 0x118   : > { %v376_v28 = vmul.f32 %v375_v27, %v359_v12 }
 0x11a   : > { %v380_v30 = vmul.f32 %v639_v26, %v376_v28 }
 0x11c   : > { %v384_v31 = vadd.f32 %v640_v29, %v380_v30 }
 0x11e   : > { %v385_v32 = vpack.c.bf16 %v384_v31, %v384_v31 }
 0x120   : > { %607 = vmatmul.msk.bf16.vlgmr.msra.gmra.mxu0 %vm347_vm0, %v385_v32 }
 0x19d   : > { %v418_v34 = vpop.f32.mrf.mxu0 }
 0x19e   : > { %v419_v35 = vadd.f32 %v641_v33, %v418_v34 }
 0x1a0   : > { %v422_v36 = vpack.c.bf16 %v419_v35, %v419_v35 }
 0x1a2   : > { %426 = vrot.lane.b32.xlu1 %v422_v36, %s671_s22  ;;  %424 = vst.msk [vmem:[%s327_s21] sm:$0xf] %vm423_vm5, %v422_v36 }
 0x1a5   : > { %v420_v37 = vpop.f32.mrf.mxu0 }
 0x1aa   : > { %430 = vrot.lane.b32.xlu1 %v422_v36, %s672_s23 }
 0x214   : > { %v427_v38 = vpop.permute.xlu1 %426 }
 0x215   : > { %429 = vst.msk [vmem:[%s334_s30] sm:$0xf] %vm423_vm5, %v427_v38 }
 0x21c   : > { %v431_v39 = vpop.permute.xlu1 %430 }
 0x21d   : > { %433 = vst.msk [vmem:[%s341_s10] sm:$0xf] %vm423_vm5, %v431_v39 }
 0x21e PF: > { %s18_s26 = sadd.s32 1, %s668_s26   ;;  %s784_s24 = smov %s664_s25 }
 0x21f   : > { %p15_p5 = scmp.ge.s32.totalorder %s18_s26, 4   ;;  %s785_s25 = smov %s787_s27 }
 0x221   :  { %17 = sbr.rel (!%p15_p5) target bundleno = 2 (0x2), region = 94 }

// kernel: alibi_transformer_forward.7
= control target key start
LH: loop header
LB: loop body
LE: loop exit
PB: predicated region body
PF: predicated region fallthrough
CT: control target
= control target key end

     0   :  { %s1024_s12 = smov 0   ;;  %s1026_s13 = smov 0   ;;  %s1189_s0 = inlined_call_operand.vmem [shape: bf16[2,8,32], index: 0, kind: input, shape index: {}]   ;;  %s1190_s1 = inlined_call_operand.vmem [shape: bf16[2,8,32], index: 1, kind: input, shape index: {}]   ;;  %s1191_s2 = inlined_call_operand.vmem [shape: bf16[2,8,32], index: 2, kind: input, shape index: {}]   ;;  %s1192_s3 = inlined_call_operand.vmem [shape: bf16[2,8,32], index: 3, kind: output, shape index: {}]  }
   0x1   :  { %s1028_s14 = smov 0  }
   0x2 LB: > { %s32_s15 = sadd.s32 1, %s989_s13  ;;  %p896_p0 = scmp.ge.s32.totalorder %s993_s14, 1  ;;  %s993_s14 = sphi %s1028_s14, %s13_s14   ;;  %s989_s13 = sphi %s1026_s13, %s1194_s13   ;;  %s985_s12 = sphi %s1024_s12, %s1193_s12  }
   0x3   : > { %p34_p1 = scmp.ge.s32.totalorder %s32_s15, 2  ;;  %p206_p2 = scmp.lt.s32.totalorder %s993_s14, 3 }
   0x5   : > { %s1196_s15 = smov (%p34_p1, %s32_s15), 0  ;;  %p207_p3 = pnand %p896_p0, %p206_p2 }
   0x6   : > { %p252_p4 = scmp.lt.s32.totalorder (!%p207_p3), %s985_s12, 1  ;;  %s996_s23 = smov (!%p207_p3), 112  }
   0x7   : > { %210 = sbr.rel (%p207_p3) target bundleno = 1211 (0x4bb), region = 32  ;;  %s997_s24 = smov (!%p207_p3), 120  }
   0x8   : > { %s998_s25 = smov (!%p207_p3), 104   ;;  %s1001_s29 = smov (!%p207_p3), 8  }
   0x9   : > { %s1002_s30 = smov (!%p207_p3), 24   ;;  %s1003_s4 = smov (!%p207_p3), 16  }
   0xc   : > { %s1198_s12 = smov (!%p252_p4, %s985_s12), 1  ;;  %vm324_vm0 = vcmask 64512   ;;  %vm293_vm1 = vcmask 7168   ;;  %v995_v3 = vmov -1e+30   ;;  %v312_v4 = vlaneseq }
   0xd   : > { %s1042_s16 = sshll.u32 %s1198_s12, 2  ;;  %294 = vst.msk [vmem:[#allocation2] sm:$0xff] %vm293_vm1, %v995_v3  ;;  %v999_v20 = vmov 0   ;;  %v1000_v21 = vmov 0.0   ;;  %vm383_vm3 = vcmask 1043456   ;;  %vm302_vm4 = vcmask 261120  }
   0xe   : > { %s267_s19 = scalar_lea.vmem %s1190_s1, %s1042_s16  ;;  %s258_s22 = scalar_lea.vmem %s1189_s0, %s1042_s16  ;;  %295 = vst.msk [vmem:[#allocation2 + $0x8] sm:$0xff] %vm293_vm1, %v995_v3  ;;  %v313_v5 = vshrl.u32 %v312_v4, 7  ;;  %v318_v6 = vand.u32 127, %v312_v4  ;;  %944 = vset.pattern.permute.xlu1 %v999_v20  ;;  %945 = vset.pattern.permute.xlu2 %v999_v20  ;;  %vm498_vm5 = vcmask 130112   ;;  %vm587_vm6 = vcmask 195712  }
   0xf   : > { %v309_v0 = vld [vmem:[%s267_s19] sm:$0xf]  ;;  %296 = vst.msk [vmem:[#allocation2 + $0x10] sm:$0xff] %vm293_vm1, %v995_v3  ;;  %946 = vset.pattern.permute.xlu0 %v999_v20  ;;  %s278_s28 = scalar_lea.vmem %s1191_s2, %s1042_s16  ;;  %vm676_vm7 = vcmask 261312   ;;  %s287_s7 = scalar_lea.vmem %s1192_s3, %s1042_s16 }
  0x10   : > { %v329_v1 = vsel %vm324_vm0, %v309_v0, 0  ;;  %v308_v2 = vld [vmem:[%s258_s22] sm:$0xf]  ;;  %297 = vst.msk [vmem:[#allocation2 + $0x18] sm:$0xff] %vm293_vm1, %v995_v3  ;;  %v1058_v7 = vsub.s32 %v313_v5, %v318_v6  ;;  %v409_v15 = vunpack.c.l.b16 %v309_v0 }
  0x11   : > { %338 = vmatpush.bf16.xpose.msra.mxu0 %v329_v1  ;;  %v404_v18 = vunpack.c.l.b16 %v308_v2  ;;  %298 = vst.msk [vmem:[#allocation3] sm:$0xff] %vm293_vm1, %v1000_v21  ;;  %v310_v28 = vld [vmem:[%s278_s28] sm:$0xf] }
  0x12   : > { %v1061_v8 = vcvt.s32.f32 %v1058_v7  ;;  %vm322_vm2 = vcmp.ge.s32.totalorder %v1058_v7, 0  ;;  %v410_v17 = vpack.c.b16 %v409_v15, %v409_v15  ;;  %299 = vst.msk [vmem:[#allocation3 + $0x8] sm:$0xff] %vm293_vm1, %v1000_v21  ;;  %v385_v29 = vsel %vm383_vm3, %v310_v28, 0 }
  0x13   : > { %v405_v19 = vpack.c.b16 %v404_v18, %v404_v18  ;;  %300 = vst.msk [vmem:[#allocation3 + $0x10] sm:$0xff] %vm293_vm1, %v1000_v21  ;;  %394 = vmatpush.bf16.msra.mxu1 %v385_v29  ;;  %v470_v1 = vunpack.c.l.b16 %v310_v28 }
  0x14   : > { %v345_v9 = vmul.f32 0.25, %v1061_v8  ;;  %503 = vrot.lane.b32.xlu2 %v410_v17, %s996_s23  ;;  %301 = vst.msk [vmem:[#allocation3 + $0x18] sm:$0xff] %vm293_vm1, %v1000_v21  ;;  %v1080_v22 = vld [vmem:[#allocation2] sm:$0xff]  ;;  %v433_v43 = vmul.f32 0.0625, %v1061_v8  ;;  %v614_v51 = vmul.f32 0.00390625, %v1061_v8  ;;  %v525_v55 = vmul.f32 0.015625, %v1061_v8 }
  0x15   : > { %v437_v3 = vld [vmem:[#allocation2 + $0x8] sm:$0xff]  ;;  %303 = vst.msk [vmem:[#allocation4] sm:$0xff] %vm302_vm4, %v1000_v21 }
  0x17   : > { %v1130_v6 = vld [vmem:[#allocation2 + $0x18] sm:$0xff] }
  0x18   : > { %901 = vmatmul.msk.bf16.vlgmr.msra.gmra.mxu0 %vm324_vm0, %v308_v2  ;;  %v471_v2 = vpack.c.b16 %v470_v1, %v470_v1 }
  0x1c   : > { %501 = vrot.lane.b32.xlu2 %v405_v19, %s996_s23  ;;  %v372_v21 = vld [vmem:[#allocation4] sm:$0xff] }
  0x24   : > { %590 = vrot.lane.b32.xlu2 %v405_v19, %s998_s25 }
  0x6e   : > { %v504_v30 = vpop.permute.xlu2 %503 }
  0x6f   : > { %v509_v31 = vsel %vm324_vm0, %v504_v30, 0 }
  0x70   : > { %518 = vmatpush.bf16.xpose.msrb.mxu1 %v509_v31 }
  0x76   : > { %v502_v38 = vpop.permute.xlu2 %501 }
  0x7e   : > { %v591_v41 = vpop.permute.xlu2 %590 }
  0x95   : > { %v340_v10 = vpop.f32.mrf.mxu0 }
  0x96   : > { %v344_v11 = vmul.f32 0.35355338, %v340_v10  ;;  %v529_v10 = vld [vmem:[#allocation2 + $0x10] sm:$0xff] }
  0x98   : > { %v346_v12 = vsub.f32 %v344_v11, %v345_v9 }
  0x9a   : > { %v347_v13 = vsel %vm322_vm2, %v346_v12, -1e+30 }
  0x9b   : > { %v349_v14 = vsel %vm324_vm0, %v347_v13, -inf }
  0x9c   : > { %350 = vmax.xlane.f32.xlu0 %v349_v14 }
  0x9d   : > { %v342_v16 = vpop.f32.mrf.mxu0 }
  0xb0   : > { %411 = vrot.lane.b32.xlu0 %v410_v17, %s997_s24 }
 0x10f   : > { %v351_v23 = vpop.xlane.xlu0 %350 }
 0x110   : > { %v1083_v24 = vmax.f32 %v1080_v22, %v351_v23 }
 0x112   : > { %v353_v25 = vsub.f32 %v1080_v22, %v1083_v24  ;;  %402 = vst.msk [vmem:[#allocation2] sm:$0xff] %vm293_vm1, %v1083_v24  ;;  %358 = vperm.xlu1 %944, %v1083_v24  }
 0x114   : > { %v354_v12 = vmul.f32 1.442695, %v353_v25 }
 0x11a   : > { %406 = vrot.lane.b32.xlu1 %v405_v19, %s997_s24 }
 0x122   : > { %592 = vrot.lane.b32.xlu1 %v410_v17, %s998_s25  ;;  %v412_v26 = vpop.permute.xlu0 %411 }
 0x123   : > { %v417_v27 = vsel %vm324_vm0, %v412_v26, 0 }
 0x124   : > { %426 = vmatpush.bf16.xpose.msra.mxu2 %v417_v27 }
 0x184   : > { %v359_v32 = vpop.permute.xlu1 %358 }
 0x185   : > { %v361_v33 = vsub.f32 %v347_v13, %v359_v32 }
 0x187   : > { %v362_v34 = vmul.f32 1.442695, %v361_v33 }
 0x189   : > { %947 = vpow2.f32 %v362_v34 }
 0x18a   : > { %949 = vpow2.f32 %v354_v12 }
 0x18c   : > { %v407_v35 = vpop.permute.xlu1 %406 }
 0x18d   : > { %903 = vmatmul.msk.bf16.vlgmr.msra.gmra.mxu2 %vm324_vm0, %v407_v35 }
 0x18f   : > { %v1100_v36 = vpop.eup %947 }
 0x190   : > { %v379_v37 = vpack.c.bf16 %v1100_v36, %v1100_v36  ;;  %v950_v17 = vpop.eup %949  ;;  %v366_v19 = vsel %vm324_vm0, %v1100_v36, 0.0 }
 0x192   : > { %902 = vmatmul.msk.bf16.vlgmr.msra.gmra.mxu1 %vm324_vm0, %v379_v37 }
 0x194   : > { %v593_v39 = vpop.permute.xlu1 %592 }
 0x195   : > { %v598_v40 = vsel %vm324_vm0, %v593_v39, 0 }
 0x196   : > { %607 = vmatpush.bf16.xpose.msrb.mxu0 %v598_v40 }
 0x19d   : > { %907 = vmatmul.msk.bf16.vlgmr.msrb.gmra.mxu0 %vm324_vm0, %v591_v41 }
 0x1a2   : > { %905 = vmatmul.msk.bf16.vlgmr.msrb.gmra.mxu1 %vm324_vm0, %v502_v38 }
 0x20f   : > { %v1108_v42 = vpop.f32.mrf.mxu1 }
 0x210   : > { %v428_v44 = vpop.f32.mrf.mxu2 }
 0x211   : > { %v432_v45 = vmul.f32 0.35355338, %v428_v44 }
 0x213   : > { %v434_v46 = vsub.f32 %v432_v45, %v433_v43 }
 0x215   : > { %v435_v47 = vsel %vm322_vm2, %v434_v46, -1e+30 }
 0x216   : > { %v438_v48 = vsel %vm324_vm0, %v435_v47, -inf }
 0x217   : > { %v398_v49 = vpop.f32.mrf.mxu1  ;;  %439 = vmax.xlane.f32.xlu1 %v438_v48 }
 0x218   : > { %v430_v50 = vpop.f32.mrf.mxu2  ;;  %v364_v49 = vld [vmem:[#allocation3] sm:$0xff] }
 0x219   : > { %v365_v50 = vmul.f32 %v950_v17, %v364_v49 }
 0x21a   : > { %v609_v52 = vpop.f32.mrf.mxu0 }
 0x21b   : > { %v613_v53 = vmul.f32 0.35355338, %v609_v52 }
 0x21d   : > { %v615_v54 = vsub.f32 %v613_v53, %v614_v51  ;;  %v454_v53 = vld [vmem:[#allocation3 + $0x8] sm:$0xff] }
 0x21f   : > { %v520_v56 = vpop.f32.mrf.mxu1  ;;  %v1118_v57 = vsel %vm322_vm2, %v615_v54, -1e+30 }
 0x220   : > { %v524_v58 = vmul.f32 0.35355338, %v520_v56  ;;  %v619_v59 = vsel %vm324_vm0, %v1118_v57, -inf }
 0x221   : > { %620 = vmax.xlane.f32.xlu0 %v619_v59 }
 0x222   : > { %v526_v60 = vsub.f32 %v524_v58, %v525_v55  ;;  %v611_v61 = vpop.f32.mrf.mxu0 }
 0x223   : > { %v635_v61 = vld [vmem:[#allocation3 + $0x18] sm:$0xff] }
 0x224   : > { %v1124_v62 = vsel %vm322_vm2, %v526_v60, -1e+30 }
 0x225   : > { %v530_v63 = vsel %vm324_vm0, %v1124_v62, -inf }
 0x226   : > { %531 = vmax.xlane.f32.xlu2 %v530_v63 }
 0x227   : > { %v522_v0 = vpop.f32.mrf.mxu1 }
 0x230   : > { %472 = vrot.lane.b32.xlu1 %v471_v2, %s997_s24 }
 0x28a   : > { %v440_v4 = vpop.xlane.xlu1 %439 }
 0x28b   : > { %v441_v5 = vmax.f32 %v437_v3, %v440_v4 }
 0x28d   : > { %500 = vst.msk [vmem:[#allocation2 + $0x8] sm:$0xff] %vm293_vm1, %v441_v5  ;;  %447 = vperm.xlu2 %945, %v441_v5   ;;  %v442_v15 = vsub.f32 %v437_v3, %v441_v5 }
 0x28f   : > { %v443_v16 = vmul.f32 1.442695, %v442_v15 }
 0x291   : > { %951 = vpow2.f32 %v443_v16 }
 0x294   : > { %v621_v7 = vpop.xlane.xlu0 %620 }
 0x295   : > { %v1133_v8 = vmax.f32 %v1130_v6, %v621_v7  ;;  %561 = vrot.lane.b32.xlu2 %v471_v2, %s996_s23 }
 0x297   : > { %v623_v9 = vsub.f32 %v1130_v6, %v1133_v8  ;;  %678 = vst.msk [vmem:[#allocation2 + $0x18] sm:$0xff] %vm293_vm1, %v1133_v8  ;;  %628 = vperm.xlu1 %944, %v1133_v8   ;;  %v952_v18 = vpop.eup %951 }
 0x298   : > { %v455_v54 = vmul.f32 %v952_v18, %v454_v53 }
 0x299   : > { %v532_v11 = vpop.xlane.xlu2 %531  ;;  %v624_v58 = vmul.f32 1.442695, %v623_v9 }
 0x29a   : > { %v533_v13 = vmax.f32 %v529_v10, %v532_v11 }
 0x29c   : > { %v534_v14 = vsub.f32 %v529_v10, %v533_v13  ;;  %589 = vst.msk [vmem:[#allocation2 + $0x10] sm:$0xff] %vm293_vm1, %v533_v13  ;;  %539 = vperm.xlu0 %946, %v533_v13  }
 0x29d   : > { %650 = vrot.lane.b32.xlu2 %v471_v2, %s998_s25 }
 0x2a2   : > { %v473_v20 = vpop.permute.xlu1 %472 }
 0x2a3   : > { %v478_v22 = vsel %vm383_vm3, %v473_v20, 0 }
 0x2a4   : > { %487 = vmatpush.bf16.msra.mxu3 %v478_v22 }
 0x2a5   : > { %375 = vperm.xlu2 %945, %v950_v17   ;;  %v546_v17 = vld [vmem:[#allocation3 + $0x10] sm:$0xff] }
 0x2ad   : > { %464 = vperm.xlu2 %945, %v952_v18  }
 0x2c1   : > { %367 = vadd.xlane.f32.xlu1 %v366_v19 }
 0x2e7   : > { %v448_v23 = vpop.permute.xlu2 %447 }
 0x2e8   : > { %v450_v24 = vsub.f32 %v435_v47, %v448_v23  ;;  %v535_v47 = vmul.f32 1.442695, %v534_v14 }
 0x2ea   : > { %v451_v25 = vmul.f32 1.442695, %v450_v24 }
 0x2ec   : > { %953 = vpow2.f32 %v451_v25 }
 0x2ef   : > { %v562_v26 = vpop.permute.xlu2 %561 }
 0x2f0   : > { %v567_v31 = vsel %vm383_vm3, %v562_v26, 0 }
 0x2f1   : > { %576 = vmatpush.bf16.msrb.mxu3 %v567_v31 }
 0x2f2   : > { %v954_v27 = vpop.eup %953 }
 0x2f3   : > { %v456_v28 = vsel %vm324_vm0, %v954_v27, 0.0  ;;  %v468_v29 = vpack.c.bf16 %v954_v27, %v954_v27 }
 0x2f4   : > { %457 = vadd.xlane.f32.xlu0 %v456_v28 }
 0x2f5   : > { %904 = vmatmul.msk.bf16.vlgmr.msra.gmra.mxu3 %vm324_vm0, %v468_v29 }
 0x2f7   : > { %v651_v30 = vpop.permute.xlu2 %650 }
 0x2f8   : > { %v656_v32 = vsel %vm383_vm3, %v651_v30, 0 }
 0x2f9   : > { %665 = vmatpush.bf16.msrb.mxu2 %v656_v32 }
 0x2ff   : > { %v376_v33 = vpop.permute.xlu2 %375 }
 0x300   : > { %v378_v34 = vmul.f32 %v376_v33, %v372_v21 }
 0x302   : > { %v400_v35 = vadd.f32 %v1108_v42, %v378_v34 }
 0x304   : > { %401 = vst.msk [vmem:[#allocation4] sm:$0xff] %vm324_vm0, %v400_v35 }
 0x307   : > { %v465_v9 = vpop.permute.xlu2 %464 }
 0x309   : > { %v629_v36 = vpop.permute.xlu1 %628 }
 0x30a   : > { %v631_v37 = vsub.f32 %v1118_v57, %v629_v36 }
 0x30b   : > { %v461_v10 = vld [vmem:[#allocation4] sm:$0xff] }
 0x30c   : > { %v632_v38 = vmul.f32 1.442695, %v631_v37  ;;  %v467_v11 = vmul.f32 %v465_v9, %v461_v10 }
 0x30e   : > { %955 = vpow2.f32 %v632_v38  ;;  %v540_v39 = vpop.permute.xlu0 %539 }
 0x30f   : > { %v542_v40 = vsub.f32 %v1124_v62, %v540_v39 }
 0x311   : > { %v543_v41 = vmul.f32 1.442695, %v542_v40 }
 0x313   : > { %957 = vpow2.f32 %v543_v41 }
 0x314   : > { %v956_v43 = vpop.eup %955  ;;  %959 = vpow2.f32 %v535_v47 }
 0x315   : > { %v637_v44 = vsel %vm324_vm0, %v956_v43, 0.0  ;;  %v649_v45 = vpack.c.bf16 %v956_v43, %v956_v43  ;;  %961 = vpow2.f32 %v624_v58 }
 0x316   : > { %638 = vadd.xlane.f32.xlu1 %v637_v44 }
 0x317   : > { %908 = vmatmul.msk.bf16.vlgmr.msrb.gmra.mxu2 %vm324_vm0, %v649_v45 }
 0x319   : > { %v958_v42 = vpop.eup %957 }
 0x31a   : > { %v560_v46 = vpack.c.bf16 %v958_v42, %v958_v42  ;;  %v960_v48 = vpop.eup %959  ;;  %v548_v3 = vsel %vm324_vm0, %v958_v42, 0.0 }
 0x31b   : > { %v962_v60 = vpop.eup %961  ;;  %v547_v20 = vmul.f32 %v960_v48, %v546_v17 }
 0x31c   : > { %906 = vmatmul.msk.bf16.vlgmr.msrb.gmra.mxu3 %vm324_vm0, %v560_v46  ;;  %v636_v62 = vmul.f32 %v962_v60, %v635_v61 }
 0x32f   : > { %556 = vperm.xlu1 %944, %v960_v48  }
 0x334   : > { %v368_v51 = vpop.xlane.xlu1 %367 }
 0x335   : > { %v369_v52 = vadd.f32 %v368_v51, %v365_v50 }
 0x337   : > { %371 = vst.msk [vmem:[#allocation3] sm:$0xff] %vm293_vm1, %v369_v52 }
 0x33e   : > { %v683_v8 = vld [vmem:[#allocation3] sm:$0xff] }
 0x367   : > { %v458_v55 = vpop.xlane.xlu0 %457 }
 0x368   : > { %v459_v56 = vadd.f32 %v458_v55, %v455_v54 }
 0x36a   : > { %460 = vst.msk [vmem:[#allocation3 + $0x8] sm:$0xff] %vm293_vm1, %v459_v56 }
 0x371   : > { %v708_v6 = vld [vmem:[#allocation3 + $0x8] sm:$0xff] }
 0x378   : > { %v489_v57 = vpop.f32.mrf.mxu3 }
 0x379   : > { %494 = vrot.lane.b32.xlu2 %v489_v57, %s1001_s29 }
 0x380   : > { %v491_v59 = vpop.f32.mrf.mxu3 }
 0x389   : > { %v639_v63 = vpop.xlane.xlu1 %638 }
 0x38a   : > { %v640_v0 = vadd.f32 %v639_v63, %v636_v62 }
 0x38c   : > { %641 = vst.msk [vmem:[#allocation3 + $0x18] sm:$0xff] %vm293_vm1, %v640_v0 }
 0x393   : > { %v758_v7 = vld [vmem:[#allocation3 + $0x18] sm:$0xff] }
 0x39a   : > { %v667_v1 = vpop.f32.mrf.mxu2 }
 0x39b   : > { %672 = vrot.lane.b32.xlu1 %v667_v1, %s1002_s30 }
 0x39f   : > { %v578_v2 = vpop.f32.mrf.mxu3 }
 0x3a0   : > { %583 = vrot.lane.b32.xlu0 %v578_v2, %s1003_s4 }
 0x3a1   : > { %v557_v15 = vpop.permute.xlu1 %556 }
 0x3a2   : > { %v669_v4 = vpop.f32.mrf.mxu2  ;;  %549 = vadd.xlane.f32.xlu2 %v548_v3 }
 0x3a7   : > { %v580_v5 = vpop.f32.mrf.mxu3 }
 0x3a8   : > { %645 = vperm.xlu0 %946, %v962_v60  }
 0x3b0   : > { %711 = vperm.xlu0 %946, %v708_v6  }
 0x3b8   : > { %761 = vperm.xlu0 %946, %v758_v7  }
 0x3ba   : > { %686 = vperm.xlu2 %945, %v683_v8  }
 0x3d3   : > { %v495_v12 = vpop.permute.xlu2 %494 }
 0x3d4   : > { %v497_v13 = vadd.f32 %v495_v12, %v467_v11 }
 0x3d6   : > { %499 = vst.msk [vmem:[#allocation4] sm:$0xff] %vm498_vm5, %v497_v13 }
 0x3dd   : > { %v553_v14 = vld [vmem:[#allocation4] sm:$0xff] }
 0x3de   : > { %v559_v16 = vmul.f32 %v557_v15, %v553_v14 }
 0x40d   : > { %v673_v28 = vpop.permute.xlu1 %672 }
 0x412   : > { %v584_v18 = vpop.permute.xlu0 %583 }
 0x413   : > { %v586_v19 = vadd.f32 %v584_v18, %v559_v16 }
 0x415   : > { %588 = vst.msk [vmem:[#allocation4] sm:$0xff] %vm587_vm6, %v586_v19  ;;  %v550_v22 = vpop.xlane.xlu2 %549 }
 0x416   : > { %v551_v23 = vadd.f32 %v550_v22, %v547_v20 }
 0x418   : > { %552 = vst.msk [vmem:[#allocation3 + $0x10] sm:$0xff] %vm293_vm1, %v551_v23 }
 0x41a   : > { %v646_v24 = vpop.permute.xlu0 %645 }
 0x41c   : > { %v642_v25 = vld [vmem:[#allocation4] sm:$0xff] }
 0x41d   : > { %v648_v26 = vmul.f32 %v646_v24, %v642_v25  ;;  %v687_v27 = vpop.permute.xlu2 %686 }
 0x41e   : > { %963 = vrcp.f32 %v687_v27  ;;  %v700_v34 = vand.u32 2147483648, %v687_v27  ;;  %v698_v37 = vand.u32 2147483647, %v687_v27  ;;  %vm694_vm9 = vweird.f32 %v687_v27 }
 0x41f   : > { %v675_v29 = vadd.f32 %v673_v28, %v648_v26  ;;  %v733_v30 = vld [vmem:[#allocation3 + $0x10] sm:$0xff] }
 0x420   : > { %736 = vperm.xlu1 %944, %v733_v30   ;;  %v701_v40 = vor.u32 1.1754944e-38, %v700_v34  ;;  %vm699_vm11 = vcmp.eq.f32.partialorder %v698_v37, 8.507059e+37 }
 0x421   : > { %677 = vst.msk [vmem:[#allocation4] sm:$0xff] %vm676_vm7, %v675_v29 }
 0x422   : > { %v712_v31 = vpop.permute.xlu0 %711 }
 0x423   : > { %965 = vrcp.f32 %v712_v31  ;;  %v725_v48 = vand.u32 2147483648, %v712_v31  ;;  %vm719_vm13 = vweird.f32 %v712_v31  ;;  %v723_v49 = vand.u32 2147483647, %v712_v31 }
 0x424   : > { %v964_v32 = vpop.eup %963 }
 0x425   : > { %v690_v21 = vmul.f32 %v964_v32, %v687_v27  ;;  %vm695_vm8 = vweird.f32 %v964_v32  ;;  %v726_v51 = vor.u32 1.1754944e-38, %v725_v48  ;;  %vm724_vm15 = vcmp.eq.f32.partialorder %v723_v49, 8.507059e+37 }
 0x426   : > { %vm696_vm10 = vmor %vm694_vm9, %vm695_vm8 }
 0x427   : > { %v691_v33 = vsub.f32 1.0, %v690_v21 }
 0x428   : > { %v682_v44 = vld [vmem:[#allocation4] sm:$0xff] }
 0x429   : > { %v966_v35 = vpop.eup %965  ;;  %v692_v36 = vmul.f32 %v964_v32, %v691_v33 }
 0x42a   : > { %v715_v38 = vmul.f32 %v966_v35, %v712_v31  ;;  %vm720_vm12 = vweird.f32 %v966_v35  ;;  %v762_v55 = vpop.permute.xlu0 %761 }
 0x42b   : > { %v693_v39 = vadd.f32 %v964_v32, %v692_v36  ;;  %vm721_vm14 = vmor %vm719_vm13, %vm720_vm12  ;;  %967 = vrcp.f32 %v762_v55  ;;  %v775_v10 = vand.u32 2147483648, %v762_v55  ;;  %v773_v11 = vand.u32 2147483647, %v762_v55 }
 0x42c   : > { %v716_v41 = vsub.f32 1.0, %v715_v38 }
 0x42d   : > { %v697_v43 = vsel %vm696_vm10, %v964_v32, %v693_v39  ;;  %v776_v13 = vor.u32 1.1754944e-38, %v775_v10  ;;  %vm774_vm9 = vcmp.eq.f32.partialorder %v773_v11, 8.507059e+37  ;;  %vm783_vm10 = vcmask 257024  }
 0x42e   : > { %v702_v45 = vsel %vm699_vm11, %v701_v40, %v697_v43  ;;  %v717_v42 = vmul.f32 %v966_v35, %v716_v41 }
 0x42f   : > { %v703_v46 = vmul.f32 %v702_v45, %v682_v44 }
 0x430   : > { %v718_v47 = vadd.f32 %v966_v35, %v717_v42 }
 0x431   : > { %705 = vst.msk [vmem:[#allocation4] sm:$0xff] %vm324_vm0, %v703_v46  ;;  %v968_v57 = vpop.eup %967 }
 0x432   : > { %v722_v50 = vsel %vm721_vm14, %v966_v35, %v718_v47  ;;  %v765_v59 = vmul.f32 %v968_v57, %v762_v55  ;;  %vm770_vm4 = vweird.f32 %v968_v57 }
 0x433   : > { %v727_v53 = vsel %vm724_vm15, %v726_v51, %v722_v50 }
 0x434   : > { %v766_v63 = vsub.f32 1.0, %v765_v59 }
 0x436   : > { %v767_v4 = vmul.f32 %v968_v57, %v766_v63 }
 0x438   : > { %v706_v52 = vld [vmem:[#allocation4] sm:$0xff]  ;;  %v768_v9 = vadd.f32 %v968_v57, %v767_v4 }
 0x439   : > { %v728_v54 = vmul.f32 %v727_v53, %v706_v52 }
 0x43b   : > { %730 = vst.msk [vmem:[#allocation4] sm:$0xff] %vm498_vm5, %v728_v54  ;;  %vm769_vm5 = vweird.f32 %v762_v55 }
 0x43c   : > { %vm771_vm8 = vmor %vm769_vm5, %vm770_vm4 }
 0x43d   : > { %v772_v12 = vsel %vm771_vm8, %v968_v57, %v768_v9 }
 0x43e   : > { %v777_v14 = vsel %vm774_vm9, %v776_v13, %v772_v12 }
 0x442   : > { %v731_v6 = vld [vmem:[#allocation4] sm:$0xff] }
 0x492   : > { %v737_v56 = vpop.permute.xlu1 %736 }
 0x493   : > { %969 = vrcp.f32 %v737_v56  ;;  %v750_v62 = vand.u32 2147483648, %v737_v56  ;;  %v748_v1 = vand.u32 2147483647, %v737_v56  ;;  %vm744_vm1 = vweird.f32 %v737_v56 }
 0x495   : > { %v751_v3 = vor.u32 1.1754944e-38, %v750_v62  ;;  %vm749_vm3 = vcmp.eq.f32.partialorder %v748_v1, 8.507059e+37 }
 0x499   : > { %v970_v58 = vpop.eup %969 }
 0x49a   : > { %v740_v60 = vmul.f32 %v970_v58, %v737_v56  ;;  %vm745_vm0 = vweird.f32 %v970_v58 }
 0x49b   : > { %vm746_vm2 = vmor %vm744_vm1, %vm745_vm0 }
 0x49c   : > { %v741_v61 = vsub.f32 1.0, %v740_v60 }
 0x49e   : > { %v742_v0 = vmul.f32 %v970_v58, %v741_v61 }
 0x4a0   : > { %v743_v2 = vadd.f32 %v970_v58, %v742_v0 }
 0x4a2   : > { %v747_v5 = vsel %vm746_vm2, %v970_v58, %v743_v2 }
 0x4a3   : > { %v752_v7 = vsel %vm749_vm3, %v751_v3, %v747_v5 }
 0x4a4   : > { %v753_v8 = vmul.f32 %v752_v7, %v731_v6 }
 0x4a6   : > { %755 = vst.msk [vmem:[#allocation4] sm:$0xff] %vm587_vm6, %v753_v8 }
 0x4ad   : > { %v756_v15 = vld [vmem:[#allocation4] sm:$0xff] }
 0x4ae   : > { %v778_v16 = vmul.f32 %v777_v14, %v756_v15 }
 0x4b0   : > { %780 = vst.msk [vmem:[#allocation4] sm:$0xff] %vm676_vm7, %v778_v16 }
 0x4b7   : > { %v781_v17 = vld [vmem:[#allocation4] sm:$0xff] }
 0x4b8   : > { %v782_v18 = vpack.c.bf16 %v781_v17, %v781_v17 }
 0x4ba   : > { %784 = vst.msk [vmem:[%s287_s7] sm:$0xf] %vm783_vm10, %v782_v18 }
 0x4bb PF: > { %s13_s14 = sadd.s32 1, %s993_s14   ;;  %s1193_s12 = smov %s989_s13 }
 0x4bc   : > { %p10_p5 = scmp.ge.s32.totalorder %s13_s14, 4   ;;  %s1194_s13 = smov %s1196_s15 }
 0x4be   :  { %12 = sbr.rel (!%p10_p5) target bundleno = 2 (0x2), region = 89 }

// kernel: alibi_transformer_forward.8
= control target key start
LH: loop header
LB: loop body
LE: loop exit
PB: predicated region body
PF: predicated region fallthrough
CT: control target
= control target key end

     0   :  { %s1029_s13 = smov 0   ;;  %s1031_s14 = smov 0   ;;  %s1129_s0 = inlined_call_operand.vmem [shape: bf16[2,8,32], index: 0, kind: input, shape index: {}]   ;;  %s1130_s1 = inlined_call_operand.vmem [shape: bf16[2,8,32], index: 1, kind: input, shape index: {}]   ;;  %s1131_s2 = inlined_call_operand.vmem [shape: bf16[32,32], index: 2, kind: input, shape index: {}]   ;;  %s1132_s3 = inlined_call_operand.vmem [shape: f32[1,32], index: 3, kind: input, shape index: {}]   ;;  %s1133_s4 = inlined_call_operand.vmem [shape: f32[1,32], index: 4, kind: input, shape index: {}]   ;;  %s1134_s5 = inlined_call_operand.vmem [shape: f32[1,32], index: 5, kind: input, shape index: {}]   ;;  %s1135_s6 = inlined_call_operand.vmem [shape: bf16[32,128], index: 6, kind: input, shape index: {}]   ;;  %s1136_s7 = inlined_call_operand.vmem [shape: f32[1,128], index: 7, kind: input, shape index: {}]   ;;  %s1137_s8 = inlined_call_operand.vmem [shape: bf16[128,32], index: 8, kind: input, shape index: {}]   ;;  %s1138_s9 = inlined_call_operand.vmem [shape: f32[1,32], index: 9, kind: input, shape index: {}]   ;;  %s1139_s10 = inlined_call_operand.vmem [shape: bf16[2,8,32], index: 10, kind: output, shape index: {}]  }
   0x1   :  { %s1033_s15 = smov 0  }
   0x2 LB: > { %s39_s16 = sadd.s32 1, %s967_s14  ;;  %p845_p0 = scmp.ge.s32.totalorder %s971_s15, 1  ;;  %s971_s15 = sphi %s1033_s15, %s20_s15   ;;  %s967_s14 = sphi %s1031_s14, %s1141_s14   ;;  %s963_s13 = sphi %s1029_s13, %s1140_s13  }
   0x3   : > { %p41_p1 = scmp.ge.s32.totalorder %s39_s16, 2  ;;  %p379_p2 = scmp.lt.s32.totalorder %s971_s15, 3 }
   0x5   : > { %s1143_s16 = smov (%p41_p1, %s39_s16), 0  ;;  %p380_p3 = pnand %p845_p0, %p379_p2 }
   0x6   : > { %p440_p4 = scmp.lt.s32.totalorder (!%p380_p3), %s963_s13, 1 }
   0x7   : > { %383 = sbr.rel (%p380_p3) target bundleno = 724 (0x2d4), region = 60 }
   0xc   : > { %v902_v0 = vld [vmem:[%s1131_s2 + $0x8] sm:$0xff]  ;;  %v901_v1 = vld [vmem:[%s1131_s2] sm:$0xff]  ;;  %s1145_s13 = smov (!%p440_p4, %s963_s13), 1  ;;  %vm500_vm0 = vcmask 261120   ;;  %v973_v13 = vmov 32.0   ;;  %v912_v30 = vld [vmem:[%s1137_s8 + $0x38] sm:$0xff] }
   0xd   : > { %510 = vmatpush.bf16.msra.mxu0 %v902_v0  ;;  %s1053_s21 = sshll.u32 %s1145_s13, 2  ;;  %v938_v4 = vld [vmem:[%s1132_s3] ss:$0 sm:$0xff]  ;;  %943 = vrcp.f32 %v973_v13  ;;  %v904_v25 = vld [vmem:[%s1135_s6 + $0x8] sm:$0xff]  ;;  %681 = vmatpush.bf16.msra.mxu2 %v912_v30  ;;  %v911_v31 = vld [vmem:[%s1137_s8 + $0x30] sm:$0xff]  ;;  %vm560_vm5 = vcmask 257024  }
   0xe   : > { %s453_s24 = scalar_lea.vmem %s1130_s1, %s1053_s21  ;;  %s446_s27 = scalar_lea.vmem %s1129_s0, %s1053_s21  ;;  %v939_v8 = vld [vmem:[%s1138_s9] ss:$0 sm:$0xff]  ;;  %599 = vmatpush.bf16.msra.mxu1 %v904_v25  ;;  %v910_v46 = vld [vmem:[%s1137_s8 + $0x28] sm:$0xff]  ;;  %v908_v48 = vld [vmem:[%s1137_s8 + $0x18] sm:$0xff] }
   0xf   : > { %v479_v2 = vld [vmem:[%s453_s24] sm:$0xf]  ;;  %v907_v49 = vld [vmem:[%s1137_s8 + $0x10] sm:$0xff]  ;;  %v906_v50 = vld [vmem:[%s1137_s8 + $0x8] sm:$0xff]  ;;  %s473_s28 = scalar_lea.vmem %s1139_s10, %s1053_s21 }
  0x10   : > { %v517_v3 = vld [vmem:[%s446_s27] sm:$0xf] }
  0x11   : > { %511 = vmatpush.bf16.msra.mxu0 %v901_v1  ;;  %v518_v5 = vunpack.c.l.bf16 %v517_v3  ;;  %v903_v27 = vld [vmem:[%s1135_s6] sm:$0xff]  ;;  %682 = vmatpush.bf16.msra.mxu2 %v911_v31 }
  0x12   : > { %600 = vmatpush.bf16.msra.mxu1 %v903_v27  ;;  %v940_v38 = vld [vmem:[%s1133_s4] ss:$0 sm:$0xff] }
  0x13   : > { %v944_v14 = vpop.eup %943  ;;  %v941_v40 = vld [vmem:[%s1134_s5] ss:$0 sm:$0xff] }
  0x14   : > { %857 = vmatmul.msk.bf16.vlgmr.msra.gmra.mxu0 %vm500_vm0, %v479_v2  ;;  %v526_v15 = vmul.f32 32.0, %v944_v14  ;;  %vm530_vm1 = vweird.f32 %v944_v14  ;;  %v909_v47 = vld [vmem:[%s1137_s8 + $0x20] sm:$0xff] }
  0x15   : > { %683 = vmatpush.bf16.msra.mxu2 %v910_v46  ;;  %v905_v51 = vld [vmem:[%s1137_s8] sm:$0xff] }
  0x16   : > { %v527_v16 = vsub.f32 1.0, %v526_v15  ;;  %v942_v52 = vld [vmem:[%s1136_s7] ss:$0 sm:$0xff] }
  0x18   : > { %v528_v17 = vmul.f32 %v944_v14, %v527_v16 }
  0x19   : > { %684 = vmatpush.bf16.msra.mxu2 %v909_v47 }
  0x1a   : > { %v529_v18 = vadd.f32 %v944_v14, %v528_v17 }
  0x1c   : > { %v531_v19 = vsel %vm530_vm1, %v944_v14, %v529_v18 }
  0x1d   : > { %685 = vmatpush.bf16.msra.mxu2 %v908_v48 }
  0x21   : > { %686 = vmatpush.bf16.msra.mxu2 %v907_v49 }
  0x25   : > { %687 = vmatpush.bf16.msra.mxu2 %v906_v50 }
  0x29   : > { %688 = vmatpush.bf16.msra.mxu2 %v905_v51 }
  0x91   : > { %v513_v6 = vpop.f32.mrf.mxu0 }
  0x92   : > { %v514_v7 = vadd.f32 %v938_v4, %v513_v6 }
  0x94   : > { %v519_v9 = vadd.f32 %v518_v5, %v514_v7 }
  0x96   : > { %v566_v10 = vadd.f32 %v939_v8, %v519_v9  ;;  %v522_v11 = vsel %vm500_vm0, %v519_v9, 0.0 }
  0x97   : > { %523 = vadd.xlane.f32.xlu0 %v522_v11 }
  0x98   : > { %567 = vst.msk [vmem:[#allocation3] sm:$0xff] %vm500_vm0, %v566_v10 }
  0x99   : > { %v515_v12 = vpop.f32.mrf.mxu0 }
  0x9f   : > { %v615_v2 = vld [vmem:[#allocation3] sm:$0xff] }
 0x10a   : > { %v524_v20 = vpop.xlane.xlu0 %523 }
 0x10b   : > { %v532_v21 = vmul.f32 %v531_v19, %v524_v20 }
 0x10d   : > { %v533_v22 = vsub.f32 %v519_v9, %v532_v21 }
 0x10f   : > { %v534_v23 = vmul.f32 %v533_v22, %v533_v22 }
 0x111   : > { %v535_v24 = vsel %vm500_vm0, %v534_v23, 0.0 }
 0x112   : > { %536 = vadd.xlane.f32.xlu0 %v535_v24 }
 0x185   : > { %v537_v26 = vpop.xlane.xlu0 %536 }
 0x186   : > { %v538_v28 = vmul.f32 %v537_v26, %v531_v19 }
 0x188   : > { %v539_v29 = vadd.f32 1e-05, %v538_v28 }
 0x18a   : > { %945 = vrsqrt.f32 %v539_v29  ;;  %vm546_vm3 = vweird.f32 %v539_v29 }
 0x190   : > { %v946_v32 = vpop.eup %945 }
 0x191   : > { %v541_v33 = vmul.f32 %v946_v32, %v539_v29  ;;  %vm547_vm2 = vweird.f32 %v946_v32 }
 0x192   : > { %vm548_vm4 = vmor %vm546_vm3, %vm547_vm2 }
 0x193   : > { %v542_v34 = vmul.f32 %v946_v32, %v541_v33 }
 0x195   : > { %v543_v35 = vmul.f32 0.5, %v542_v34 }
 0x197   : > { %v544_v36 = vsub.f32 1.5, %v543_v35 }
 0x199   : > { %v545_v37 = vmul.f32 %v946_v32, %v544_v36 }
 0x19b   : > { %v549_v39 = vsel %vm548_vm4, %v946_v32, %v545_v37 }
 0x19c   : > { %v550_v41 = vmul.f32 %v549_v39, %v533_v22 }
 0x19e   : > { %v554_v42 = vmul.f32 %v940_v38, %v550_v41 }
 0x1a0   : > { %v558_v43 = vadd.f32 %v941_v40, %v554_v42 }
 0x1a2   : > { %v559_v44 = vpack.c.bf16 %v558_v43, %v558_v43 }
 0x1a4   : > { %561 = vst.msk [vmem:[#allocation2] sm:$0xf] %vm560_vm5, %v559_v44 }
 0x1ab   : > { %v568_v45 = vld [vmem:[#allocation2] sm:$0xf] }
 0x1ac   : > { %866 = vmatmul.msk.bf16.vlgmr.msra.gmra.mxu1 %vm500_vm0, %v568_v45 }
 0x229   : > { %v602_v53 = vpop.f32.mrf.mxu1 }
 0x22a   : > { %v603_v54 = vadd.f32 %v942_v52, %v602_v53 }
 0x22c   : > { %v607_v55 = vmul.f32 0.044715, %v603_v54  ;;  %v606_v62 = vmul.f32 0.5, %v603_v54 }
 0x22e   : > { %v608_v56 = vmul.f32 %v607_v55, %v603_v54 }
 0x230   : > { %v609_v57 = vmul.f32 %v608_v56, %v603_v54 }
 0x231   : > { %v604_v58 = vpop.f32.mrf.mxu1 }
 0x232   : > { %v610_v59 = vadd.f32 %v609_v57, %v603_v54 }
 0x234   : > { %v611_v60 = vmul.f32 0.7978846, %v610_v59 }
 0x236   : > { %947 = vtanh.f32 %v611_v60 }
 0x23c   : > { %v948_v61 = vpop.eup %947 }
 0x23d   : > { %v613_v63 = vadd.f32 1.0, %v948_v61 }
 0x23f   : > { %v614_v0 = vmul.f32 %v613_v63, %v606_v62 }
 0x241   : > { %v616_v1 = vpack.c.bf16 %v614_v0, %v614_v0 }
 0x243   : > { %689 = vmatmul.bf16.vlgmr.msra.gmra.mxu2 %v616_v1 }
 0x2c6   : > { %v690_v3 = vpop.f32.mrf.mxu2 }
 0x2c7   : > { %v694_v4 = vadd.f32 %v690_v3, %v615_v2 }
 0x2c9   : > { %695 = vst.msk [vmem:[#allocation3] sm:$0xff] %vm500_vm0, %v694_v4 }
 0x2ce   : > { %v692_v5 = vpop.f32.mrf.mxu2 }
 0x2d0   : > { %v699_v6 = vld [vmem:[#allocation3] sm:$0xff] }
 0x2d1   : > { %v700_v7 = vpack.c.bf16 %v699_v6, %v699_v6 }
 0x2d3   : > { %702 = vst.msk [vmem:[%s473_s28] sm:$0xf] %vm560_vm5, %v700_v7 }
 0x2d4 PF: > { %s20_s15 = sadd.s32 1, %s971_s15   ;;  %s1140_s13 = smov %s967_s14 }
 0x2d5   : > { %p17_p5 = scmp.ge.s32.totalorder %s20_s15, 4   ;;  %s1141_s14 = smov %s1143_s16 }
 0x2d7   :  { %19 = sbr.rel (!%p17_p5) target bundleno = 2 (0x2), region = 110 }

</bundles_post_ra>
